<compile_context>
chip_gen: v6e
topology: v6e:2x2x1
jax: 0.10.0
libtpu: 0.0.40
codegen_flags: <defaults>
</compile_context>

<pallas_src>
import jax
import jax.numpy as jnp
from jax import lax
from jax.experimental import pallas as pl
from jax.experimental.pallas import tpu as pltpu


_LANES = 128
_DEFAULT_TILE_ROWS = 2048        # 2048 x 128 lanes = 1 MiB per f32 operand block
_SMALL_M = 16384                 # below this many quaternions, use the XLA path
_VMEM_LIMIT = 48 * 1024 * 1024   # pipeline buffers + in-kernel temporaries


def _mult_quat_kernel(q1_ref, q2_ref, o_ref):
    """Hamilton product on lane-interleaved (AoS) quaternions.

    Refs are (rows, 128) tiles whose lanes hold [q0.w q0.x q0.y q0.z q1.w ...]
    (32 quaternions per row).  For output component d of a quad,
        out[d] = sum_k a[k] * sign[d, k] * b[d ^ k].
    The XOR-by-k lane permutations of b and the within-quad broadcasts of a
    are built from pltpu.roll lane rotations selected by lane-index masks, so
    every op is full-vreg VPU/XLU work and the store stays lane-dense.
    """
    a = q1_ref[...].astype(jnp.float32)
    b = q2_ref[...].astype(jnp.float32)
    shape = a.shape

    lane = lax.broadcasted_iota(jnp.int32, shape, dimension=1)
    even1 = (lane & 1) == 0          # lane component in {0, 2}
    lo2 = (lane & 2) == 0            # lane component in {0, 1}

    def rot(x, s):                   # lane rotation; result[l] = x[(l - s) % 128]
        return pltpu.roll(x, s % _LANES, axis=1)

    # Within-quad broadcasts of a's components (a_k[l] = a[quad_base + k]).
    # Selected branches never cross a quad, so the 128-lane wraparound is safe.
    t_even = jnp.where(even1, a, rot(a, 1))       # both lanes of a pair <- even lane
    t_odd = jnp.where(even1, rot(a, -1), a)       # both lanes of a pair <- odd lane
    a0 = jnp.where(lo2, t_even, rot(t_even, 2))
    a1 = jnp.where(lo2, t_odd, rot(t_odd, 2))
    a2 = jnp.where(lo2, rot(t_even, -2), t_even)
    a3 = jnp.where(lo2, rot(t_odd, -2), t_odd)

    # XOR-by-k lane permutations of b within each quad (b_xk[l] = b[l ^ k]).
    b_x1 = jnp.where(even1, rot(b, -1), rot(b, 1))
    b_x2 = jnp.where(lo2, rot(b, -2), rot(b, 2))
    b_x3 = jnp.where(lo2, rot(b_x1, -2), rot(b_x1, 2))

    # Per-lane signs s_k[l] = sign[l % 4, k] (matches the module's sign table).
    one = jnp.float32(1.0)
    s1 = jnp.where(even1, -one, one)                          # (-1, +1, -1, +1)
    s2 = jnp.where(jnp.logical_xor(even1, lo2), one, -one)    # (-1, +1, +1, -1)
    s3 = jnp.where(lo2, -one, one)                            # (-1, -1, +1, +1)

    out = a0 * b + a1 * (s1 * b_x1) + a2 * (s2 * b_x2) + a3 * (s3 * b_x3)
    o_ref[...] = out.astype(o_ref.dtype)


def _round_up(x, m):
    return ((x + m - 1) // m) * m


def _mult_quat_ref(q1, q2):
    """Pure-JAX reference mirroring the PyTorch loop exactly (also the fast path)."""
    inds = [[0, 1, 2, 3], [1, 0, 3, 2], [2, 3, 0, 1], [3, 2, 1, 0]]
    sign = [[1.0, -1.0, -1.0, -1.0], [1.0, 1.0, 1.0, -1.0],
            [1.0, -1.0, 1.0, 1.0], [1.0, 1.0, -1.0, 1.0]]
    prods = []
    for d in range(4):
        q2sel = jnp.stack(
            [q2[..., inds[d][k]] * sign[d][k] for k in range(4)], axis=-1)
        prods.append(jnp.sum(q1 * q2sel, axis=-1, keepdims=True))
    return jnp.concatenate(prods, axis=-1)


def mult_quat(q1, q2, *, tile_rows=None, small_threshold=_SMALL_M):
    """Hamilton product over the last axis (..., 4); matches Mult_quat.forward."""
    assert q1.shape == q2.shape and q1.shape[-1] == 4
    out_dtype = jnp.promote_types(q1.dtype, q2.dtype)
    shape = q1.shape
    M = 1
    for s in shape[:-1]:
        M *= s

    # Small inputs: a fused XLA elementwise beats kernel launch + padding.
    if M < small_threshold:
        return _mult_quat_ref(q1, q2).astype(out_dtype)

    E = 4 * M                         # total scalar elements
    R = pl.cdiv(E, _LANES)            # rows of 128 lane-interleaved scalars
    E_pad = R * _LANES

    def to_rows(q):
        flat = q.reshape(E)           # free: contiguous bitcast, keeps AoS layout
        if E_pad != E:                # only when M % 32 != 0 (one extra copy)
            flat = jnp.pad(flat, (0, E_pad - E))
        return flat.reshape(R, _LANES)

    q1_r = to_rows(q1)
    q2_r = to_rows(q2)

    if tile_rows is None:
        if R <= _DEFAULT_TILE_ROWS:
            tile_rows = R             # single full-array block (always legal)
        else:
            # Even number of near-equal tiles: v7x's two TensorCores each get
            # half of the "parallel" grid; tiles stay <= 1 MiB/operand in f32.
            n = pl.cdiv(R, _DEFAULT_TILE_ROWS)
            n += n % 2
            tile_rows = min(_DEFAULT_TILE_ROWS, _round_up(pl.cdiv(R, n), 32))
    else:
        # Multiple of 32 rows keeps the (8/16, 128) min-tile rule for any dtype.
        tile_rows = min(_round_up(max(int(tile_rows), 1), 32), R)

    num_tiles = pl.cdiv(R, tile_rows)
    spec = pl.BlockSpec((tile_rows, _LANES), lambda i: (i, 0))

    out_rows = pl.pallas_call(
        _mult_quat_kernel,
        out_shape=jax.ShapeDtypeStruct((R, _LANES), out_dtype),
        grid=(num_tiles,),
        in_specs=[spec, spec],
        out_specs=spec,
        compiler_params=pltpu.CompilerParams(
            dimension_semantics=("parallel",),   # v7x megacore splits tiles
            vmem_limit_bytes=_VMEM_LIMIT,
        ),
    )(q1_r, q2_r)

    out = out_rows.reshape(E_pad)
    if E_pad != E:
        out = out[:E]
    return out.reshape(shape)
    # TODO(synk): if the surrounding model ever adopts an SoA quaternion layout,
    # the in-kernel lane shuffles disappear and this becomes a pure stream op.


if __name__ == "__main__":
    key = jax.random.PRNGKey(0)
    keys = jax.random.split(key, 10)

    # 1) Primary small case matching the module's (B, N, 4) convention.
    #    Falls onto the fused-XLA fast path (kernel overhead would dominate).
    q1 = jax.random.normal(keys[0], (2, 8, 4), dtype=jnp.float32)
    q2 = jax.random.normal(keys[1], (2, 8, 4), dtype=jnp.float32)
    out = mult_quat(q1, q2)
    jax.block_until_ready(out)
    assert out.shape == (2, 8, 4)
    assert jnp.allclose(out, _mult_quat_ref(q1, q2), atol=1e-5, rtol=1e-5)

    # 2) Pallas path, aligned input, single (128, 128) block.
    q1 = jax.random.normal(keys[2], (2, 2048, 4), dtype=jnp.float32)
    q2 = jax.random.normal(keys[3], (2, 2048, 4), dtype=jnp.float32)
    out = mult_quat(q1, q2, small_threshold=0)
    jax.block_until_ready(out)
    assert jnp.allclose(out, _mult_quat_ref(q1, q2), atol=1e-5, rtol=1e-5)

    # 3) Pallas path, unaligned (padding) + multi-tile grid with a ragged last
    #    block: M=3000 -> R=94 rows, tile_rows=32 -> grid=3.
    q1 = jax.random.normal(keys[4], (3, 1000, 4), dtype=jnp.float32)
    q2 = jax.random.normal(keys[5], (3, 1000, 4), dtype=jnp.float32)
    out = mult_quat(q1, q2, small_threshold=0, tile_rows=32)
    jax.block_until_ready(out)
    assert jnp.allclose(out, _mult_quat_ref(q1, q2), atol=1e-5, rtol=1e-5)

    # 4) bf16 end-to-end: HBM in/out stays bf16, math in f32 inside vregs.
    q1 = jax.random.normal(keys[6], (2, 4096, 4), dtype=jnp.bfloat16)
    q2 = jax.random.normal(keys[7], (2, 4096, 4), dtype=jnp.bfloat16)
    out = mult_quat(q1, q2, small_threshold=0)
    jax.block_until_ready(out)
    assert out.dtype == jnp.bfloat16
    ref = _mult_quat_ref(q1.astype(jnp.float32), q2.astype(jnp.float32))
    assert jnp.allclose(out.astype(jnp.float32), ref, atol=7e-2, rtol=7e-2)

    # 5) Default config on a larger input: R=4096 -> two balanced 2048-row
    #    tiles, so the "parallel" axis feeds both v7x TensorCores.
    q1 = jax.random.normal(keys[8], (4, 32768, 4), dtype=jnp.float32)
    q2 = jax.random.normal(keys[9], (4, 32768, 4), dtype=jnp.float32)
    out = mult_quat(q1, q2)
    jax.block_until_ready(out)
    assert jnp.allclose(out, _mult_quat_ref(q1, q2), atol=1e-5, rtol=1e-5)

    print("KERNEL_OK")
</pallas_src>

<mosaic_0001>
module attributes {stable_mosaic.version = 11 : i64} {
  func.func @_mult_quat_kernel(%arg0: i32, %arg1: memref<128x128xf32, #tpu.memory_space<vmem>>, %arg2: memref<128x128xf32, #tpu.memory_space<vmem>>, %arg3: memref<128x128xf32, #tpu.memory_space<vmem>>) attributes {dimension_semantics = [#tpu.dimension_semantics<parallel>], iteration_bounds = array<i64: 1>, scalar_prefetch = 0 : i64, scratch_operands = 0 : i64, tpu.core_type = #tpu.core_type<tc>, window_params = [{transform_indices = @transform_0, window_bounds = array<i64: 128, 128>}, {transform_indices = @transform_1, window_bounds = array<i64: 128, 128>}, {transform_indices = @transform_2, window_bounds = array<i64: 128, 128>}]} {
    %c0 = arith.constant 0 : index
    %c0_0 = arith.constant 0 : index
    %0 = vector.load %arg1[%c0, %c0_0] : memref<128x128xf32, #tpu.memory_space<vmem>>, vector<128x128xf32>
    %c0_1 = arith.constant 0 : index
    %c0_2 = arith.constant 0 : index
    %1 = vector.load %arg2[%c0_1, %c0_2] : memref<128x128xf32, #tpu.memory_space<vmem>>, vector<128x128xf32>
    %2 = tpu.iota {dimensions = array<i32: 1>} : vector<128x128xi32>
    %c1_i32 = arith.constant 1 : i32
    %3 = vector.broadcast %c1_i32 : i32 to vector<128x128xi32>
    %4 = arith.andi %2, %3 : vector<128x128xi32>
    %c0_i32 = arith.constant 0 : i32
    %5 = vector.broadcast %c0_i32 : i32 to vector<128x128xi32>
    %6 = arith.cmpi eq, %4, %5 : vector<128x128xi32>
    %c2_i32 = arith.constant 2 : i32
    %7 = vector.broadcast %c2_i32 : i32 to vector<128x128xi32>
    %8 = arith.andi %2, %7 : vector<128x128xi32>
    %c0_i32_3 = arith.constant 0 : i32
    %9 = vector.broadcast %c0_i32_3 : i32 to vector<128x128xi32>
    %10 = arith.cmpi eq, %8, %9 : vector<128x128xi32>
    %c1_i32_4 = arith.constant 1 : i32
    %11 = tpu.dynamic_rotate %0 by %c1_i32_4 dim 1 : vector<128x128xf32>, i32 -> vector<128x128xf32>
    %12 = arith.select %6, %0, %11 : vector<128x128xi1>, vector<128x128xf32>
    %c127_i32 = arith.constant 127 : i32
    %13 = tpu.dynamic_rotate %0 by %c127_i32 dim 1 : vector<128x128xf32>, i32 -> vector<128x128xf32>
    %14 = arith.select %6, %13, %0 : vector<128x128xi1>, vector<128x128xf32>
    %c2_i32_5 = arith.constant 2 : i32
    %15 = tpu.dynamic_rotate %12 by %c2_i32_5 dim 1 : vector<128x128xf32>, i32 -> vector<128x128xf32>
    %16 = arith.select %10, %12, %15 : vector<128x128xi1>, vector<128x128xf32>
    %c2_i32_6 = arith.constant 2 : i32
    %17 = tpu.dynamic_rotate %14 by %c2_i32_6 dim 1 : vector<128x128xf32>, i32 -> vector<128x128xf32>
    %18 = arith.select %10, %14, %17 : vector<128x128xi1>, vector<128x128xf32>
    %c126_i32 = arith.constant 126 : i32
    %19 = tpu.dynamic_rotate %12 by %c126_i32 dim 1 : vector<128x128xf32>, i32 -> vector<128x128xf32>
    %20 = arith.select %10, %19, %12 : vector<128x128xi1>, vector<128x128xf32>
    %c126_i32_7 = arith.constant 126 : i32
    %21 = tpu.dynamic_rotate %14 by %c126_i32_7 dim 1 : vector<128x128xf32>, i32 -> vector<128x128xf32>
    %22 = arith.select %10, %21, %14 : vector<128x128xi1>, vector<128x128xf32>
    %c127_i32_8 = arith.constant 127 : i32
    %23 = tpu.dynamic_rotate %1 by %c127_i32_8 dim 1 : vector<128x128xf32>, i32 -> vector<128x128xf32>
    %c1_i32_9 = arith.constant 1 : i32
    %24 = tpu.dynamic_rotate %1 by %c1_i32_9 dim 1 : vector<128x128xf32>, i32 -> vector<128x128xf32>
    %25 = arith.select %6, %23, %24 : vector<128x128xi1>, vector<128x128xf32>
    %c126_i32_10 = arith.constant 126 : i32
    %26 = tpu.dynamic_rotate %1 by %c126_i32_10 dim 1 : vector<128x128xf32>, i32 -> vector<128x128xf32>
    %c2_i32_11 = arith.constant 2 : i32
    %27 = tpu.dynamic_rotate %1 by %c2_i32_11 dim 1 : vector<128x128xf32>, i32 -> vector<128x128xf32>
    %28 = arith.select %10, %26, %27 : vector<128x128xi1>, vector<128x128xf32>
    %c126_i32_12 = arith.constant 126 : i32
    %29 = tpu.dynamic_rotate %25 by %c126_i32_12 dim 1 : vector<128x128xf32>, i32 -> vector<128x128xf32>
    %c2_i32_13 = arith.constant 2 : i32
    %30 = tpu.dynamic_rotate %25 by %c2_i32_13 dim 1 : vector<128x128xf32>, i32 -> vector<128x128xf32>
    %31 = arith.select %10, %29, %30 : vector<128x128xi1>, vector<128x128xf32>
    %cst = arith.constant 0.000000e+00 : f32
    %cst_14 = arith.constant 1.000000e+00 : f32
    %32 = arith.subf %cst, %cst_14 : f32
    %cst_15 = arith.constant 1.000000e+00 : f32
    %33 = vector.broadcast %32 : f32 to vector<128x128xf32>
    %34 = vector.broadcast %cst_15 : f32 to vector<128x128xf32>
    %35 = arith.select %6, %33, %34 : vector<128x128xi1>, vector<128x128xf32>
    %36 = arith.xori %6, %10 : vector<128x128xi1>
    %cst_16 = arith.constant 0.000000e+00 : f32
    %cst_17 = arith.constant 1.000000e+00 : f32
    %37 = arith.subf %cst_16, %cst_17 : f32
    %cst_18 = arith.constant 1.000000e+00 : f32
    %38 = vector.broadcast %cst_18 : f32 to vector<128x128xf32>
    %39 = vector.broadcast %37 : f32 to vector<128x128xf32>
    %40 = arith.select %36, %38, %39 : vector<128x128xi1>, vector<128x128xf32>
    %cst_19 = arith.constant 0.000000e+00 : f32
    %cst_20 = arith.constant 1.000000e+00 : f32
    %41 = arith.subf %cst_19, %cst_20 : f32
    %cst_21 = arith.constant 1.000000e+00 : f32
    %42 = vector.broadcast %41 : f32 to vector<128x128xf32>
    %43 = vector.broadcast %cst_21 : f32 to vector<128x128xf32>
    %44 = arith.select %10, %42, %43 : vector<128x128xi1>, vector<128x128xf32>
    %45 = arith.mulf %16, %1 : vector<128x128xf32>
    %46 = arith.mulf %35, %25 : vector<128x128xf32>
    %47 = arith.mulf %18, %46 : vector<128x128xf32>
    %48 = arith.addf %45, %47 : vector<128x128xf32>
    %49 = arith.mulf %40, %28 : vector<128x128xf32>
    %50 = arith.mulf %20, %49 : vector<128x128xf32>
    %51 = arith.addf %48, %50 : vector<128x128xf32>
    %52 = arith.mulf %44, %31 : vector<128x128xf32>
    %53 = arith.mulf %22, %52 : vector<128x128xf32>
    %54 = arith.addf %51, %53 : vector<128x128xf32>
    %c0_22 = arith.constant 0 : index
    %c0_23 = arith.constant 0 : index
    %55 = vector.load %arg3[%c0_22, %c0_23] : memref<128x128xf32, #tpu.memory_space<vmem>>, vector<128x128xf32>
    tpu.vector_store %arg3[%c0_22, %c0_23], %54 {strides = array<i32>} : memref<128x128xf32, #tpu.memory_space<vmem>>, vector<128x128xf32>,
    return
  }
  func.func @transform_0(%arg0: i32) -> (i32, i32) {
    %c0_i32 = arith.constant 0 : i32
    %c0_i32_0 = arith.constant 0 : i32
    return %arg0, %c0_i32 : i32, i32
  }
  func.func @transform_1(%arg0: i32) -> (i32, i32) {
    %c0_i32 = arith.constant 0 : i32
    %c0_i32_0 = arith.constant 0 : i32
    return %arg0, %c0_i32 : i32, i32
  }
  func.func @transform_2(%arg0: i32) -> (i32, i32) {
    %c0_i32 = arith.constant 0 : i32
    %c0_i32_0 = arith.constant 0 : i32
    return %arg0, %c0_i32 : i32, i32
  }
}

</mosaic_0001>

<bundles_post_ra>
// kernel: tpu_custom_call.1
= control target key start
LH: loop header
LB: loop body
LE: loop exit
PB: predicated region body
PF: predicated region fallthrough
CT: control target
= control target key end

     0   :  { %7 = vsyncpa [#allocation3], 0  ;;  %s2322_s0 = inlined_call_operand.hbm [shape: f32[128,128], index: 0, kind: input, shape index: {}]   ;;  %s2323_s1 = inlined_call_operand.hbm [shape: f32[128,128], index: 1, kind: input, shape index: {}]   ;;  %s2324_s2 = inlined_call_operand.hbm [shape: f32[128,128], index: 2, kind: output, shape index: {}]  }
   0x1   :  { %8 = vsyncpa [#allocation6], 0 }
   0x2   :  { %9 = vsyncpa [#allocation4], 0  ;;  %s881_s9 = smov [#allocation2]  }
   0x3   :  { %s15_s10 = sshll.u32 %s881_s9, 4  ;;  %s16_s10 = int_to_ptr.vmem [resolvable:$true] %s15_s10 }
   0x4   :  { %s823_s11 = scalar_lea.vmem %s16_s10, 2048  ;;  %p828_p1 = scmp.lt.s32.totalorder %s16_s10, %s16_s10 }
   0x5   :  { %p824_p0 = scmp.ne.s32.totalorder %s16_s10, %s823_s11  ;;  %p829_p2 = scmp.lt.s32.totalorder %s823_s11, %s823_s11 }
   0x7   :  { %p830_p3 = por %p829_p2, %p828_p1 }
   0x9   :  { %p831_p4 = pnand %p830_p3, %p824_p0 }
   0xb   :  { %834 = shalt.err (!%p831_p4)
}
   0xc   :  { %s882_s12 = smov 128   ;;  %s883_s13 = smov 8  }
   0xd   :  { %21 = dma.hbm_to_vmem [thread:$0]  %s2322_s0, 2048, %s16_s10, [#allocation3], %s882_s12, %s882_s12, %s883_s13  }
   0xe   :  { %s884_s16 = smov [#allocation5]  }
   0xf   :  { %s27_s17 = sshll.u32 %s884_s16, 4  ;;  %s28_s17 = int_to_ptr.vmem [resolvable:$true] %s27_s17 }
  0x10   :  { %s843_s18 = scalar_lea.vmem %s28_s17, 2048  ;;  %p848_p6 = scmp.lt.s32.totalorder %s28_s17, %s28_s17 }
  0x11   :  { %p844_p5 = scmp.ne.s32.totalorder %s28_s17, %s843_s18  ;;  %p849_p7 = scmp.lt.s32.totalorder %s843_s18, %s843_s18 }
  0x13   :  { %p850_p8 = por %p849_p7, %p848_p6 }
  0x15   :  { %p851_p9 = pnand %p850_p8, %p844_p5 }
  0x17   :  { %854 = shalt.err (!%p851_p9)
}
  0x18   :  { %33 = dma.hbm_to_vmem [thread:$0]  %s2323_s1, 2048, %s28_s17, [#allocation6], %s882_s12, %s882_s12, %s883_s13  }
  0x19   :  { %875 = dma.done.wait [#allocation3], 2048  }
  0x1a   :  { %876 = vsyncadd [#allocation3], 4294965248 }
  0x1b   :  { %877 = dma.done.wait [#allocation6], 2048  }
  0x1c   :  { %878 = vsyncadd [#allocation6], 4294965248  ;;  %v919_v0 = vld [vmem:[#allocation2] sm:$0xff]  ;;  %v921_v1 = vld [vmem:[#allocation2 + $0x10] sm:$0xff]  ;;  %s885_s0 = smov 1   ;;  %s886_s1 = smov 127   ;;  %v72_v16 = vlaneseq }
  0x1d   :  { %78 = vrot.lane.b32.xlu0 %v919_v0, %s885_s0  ;;  %82 = vrot.lane.b32.xlu1 %v921_v1, %s885_s0  ;;  %v927_v2 = vld [vmem:[#allocation2 + $0x8] sm:$0xff]  ;;  %v929_v3 = vld [vmem:[#allocation2 + $0x18] sm:$0xff]  ;;  %v935_v4 = vld [vmem:[#allocation2 + $0x20] sm:$0xff]  ;;  %s887_s21 = smov 2   ;;  %s888_s22 = smov 126  }
  0x1e   :  { %v937_v5 = vld [vmem:[#allocation2 + $0x28] sm:$0xff]  ;;  %v943_v6 = vld [vmem:[#allocation2 + $0x30] sm:$0xff]  ;;  %v945_v7 = vld [vmem:[#allocation2 + $0x38] sm:$0xff]  ;;  %v1015_v17 = vand.u32 127, %v72_v16  ;;  %s891_s23 = smov [#allocation7]  }
  0x1f   :  { %v951_v8 = vld [vmem:[#allocation2 + $0x40] sm:$0xff]  ;;  %v953_v9 = vld [vmem:[#allocation2 + $0x48] sm:$0xff]  ;;  %v959_v10 = vld [vmem:[#allocation2 + $0x50] sm:$0xff]  ;;  %s791_s24 = sshll.u32 %s891_s23, 4  ;;  %s792_s24 = int_to_ptr.vmem [resolvable:$true] %s791_s24 }
  0x20   :  { %v961_v11 = vld [vmem:[#allocation2 + $0x58] sm:$0xff]  ;;  %v967_v12 = vld [vmem:[#allocation2 + $0x60] sm:$0xff]  ;;  %v969_v13 = vld [vmem:[#allocation2 + $0x68] sm:$0xff]  ;;  %v74_v18 = vand.u32 1, %v1015_v17  ;;  %s855_s25 = scalar_lea.vmem %s792_s24, 2048  ;;  %p860_p11 = scmp.lt.s32.totalorder %s792_s24, %s792_s24 }
  0x21   :  { %80 = vrot.lane.b32.xlu0 %v927_v2, %s885_s0  ;;  %84 = vrot.lane.b32.xlu1 %v929_v3, %s885_s0  ;;  %v975_v14 = vld [vmem:[#allocation2 + $0x70] sm:$0xff]  ;;  %v977_v15 = vld [vmem:[#allocation2 + $0x78] sm:$0xff]  ;;  %p856_p10 = scmp.ne.s32.totalorder %s792_s24, %s855_s25  ;;  %p861_p12 = scmp.lt.s32.totalorder %s855_s25, %s855_s25 }
  0x22   :  { %vm1018_vm0 = vcmp.eq.s32.totalorder %v74_v18, 0 }
  0x23   :  { %p862_p13 = por %p861_p12, %p860_p11 }
  0x25   :  { %86 = vrot.lane.b32.xlu0 %v935_v4, %s885_s0  ;;  %88 = vrot.lane.b32.xlu1 %v937_v5, %s885_s0  ;;  %p863_p0 = pnand %p862_p13, %p856_p10 }
  0x29   :  { %90 = vrot.lane.b32.xlu0 %v943_v6, %s885_s0  ;;  %92 = vrot.lane.b32.xlu1 %v945_v7, %s885_s0 }
  0x2d   :  { %94 = vrot.lane.b32.xlu0 %v951_v8, %s885_s0  ;;  %96 = vrot.lane.b32.xlu1 %v953_v9, %s885_s0 }
  0x31   :  { %98 = vrot.lane.b32.xlu0 %v959_v10, %s885_s0  ;;  %100 = vrot.lane.b32.xlu1 %v961_v11, %s885_s0 }
  0x35   :  { %102 = vrot.lane.b32.xlu0 %v967_v12, %s885_s0  ;;  %104 = vrot.lane.b32.xlu1 %v969_v13, %s885_s0 }
  0x39   :  { %106 = vrot.lane.b32.xlu0 %v975_v14, %s885_s0  ;;  %108 = vrot.lane.b32.xlu1 %v977_v15, %s885_s0 }
  0x3d   :  { %126 = vrot.lane.b32.xlu0 %v919_v0, %s886_s1  ;;  %128 = vrot.lane.b32.xlu1 %v927_v2, %s886_s1 }
  0x41   :  { %130 = vrot.lane.b32.xlu0 %v921_v1, %s886_s1  ;;  %132 = vrot.lane.b32.xlu1 %v929_v3, %s886_s1 }
  0x45   :  { %134 = vrot.lane.b32.xlu0 %v935_v4, %s886_s1  ;;  %136 = vrot.lane.b32.xlu1 %v937_v5, %s886_s1 }
  0x49   :  { %138 = vrot.lane.b32.xlu0 %v943_v6, %s886_s1  ;;  %140 = vrot.lane.b32.xlu1 %v945_v7, %s886_s1 }
  0x4d   :  { %142 = vrot.lane.b32.xlu0 %v951_v8, %s886_s1  ;;  %144 = vrot.lane.b32.xlu1 %v953_v9, %s886_s1 }
  0x51   :  { %146 = vrot.lane.b32.xlu0 %v959_v10, %s886_s1  ;;  %148 = vrot.lane.b32.xlu1 %v961_v11, %s886_s1 }
  0x55   :  { %150 = vrot.lane.b32.xlu0 %v967_v12, %s886_s1  ;;  %152 = vrot.lane.b32.xlu1 %v969_v13, %s886_s1 }
  0x59   :  { %154 = vrot.lane.b32.xlu0 %v975_v14, %s886_s1  ;;  %156 = vrot.lane.b32.xlu1 %v977_v15, %s886_s1 }
  0x8f   :  { %v79_v20 = vpop.permute.xlu0 %78  ;;  %v83_v21 = vpop.permute.xlu1 %82 }
  0x90   :  { %v1025_v22 = vsel %vm1018_vm0, %v919_v0, %v79_v20  ;;  %v1032_v23 = vsel %vm1018_vm0, %v921_v1, %v83_v21 }
  0x91   :  { %2377 = vst [vmem:[#allocation11_spill] sm:$0xff] %v1025_v22  ;;  %174 = vrot.lane.b32.xlu0 %v1025_v22, %s887_s21 }
  0x93   :  { %v81_v24 = vpop.permute.xlu0 %80  ;;  %v85_v25 = vpop.permute.xlu1 %84 }
  0x94   :  { %v1037_v26 = vsel %vm1018_vm0, %v927_v2, %v81_v24  ;;  %v1046_v27 = vsel %vm1018_vm0, %v929_v3, %v85_v25 }
  0x95   :  { %178 = vrot.lane.b32.xlu0 %v1032_v23, %s887_s21  ;;  %176 = vrot.lane.b32.xlu1 %v1037_v26, %s887_s21 }
  0x97   :  { %v87_v28 = vpop.permute.xlu0 %86  ;;  %v89_v29 = vpop.permute.xlu1 %88 }
  0x98   :  { %v1051_v30 = vsel %vm1018_vm0, %v935_v4, %v87_v28  ;;  %v1060_v31 = vsel %vm1018_vm0, %v937_v5, %v89_v29 }
  0x99   :  { %180 = vrot.lane.b32.xlu1 %v1046_v27, %s887_s21  ;;  %182 = vrot.lane.b32.xlu0 %v1051_v30, %s887_s21 }
  0x9b   :  { %v91_v32 = vpop.permute.xlu0 %90  ;;  %v93_v33 = vpop.permute.xlu1 %92 }
  0x9c   :  { %v1065_v34 = vsel %vm1018_vm0, %v943_v6, %v91_v32  ;;  %v1074_v35 = vsel %vm1018_vm0, %v945_v7, %v93_v33 }
  0x9d   :  { %184 = vrot.lane.b32.xlu1 %v1060_v31, %s887_s21  ;;  %186 = vrot.lane.b32.xlu0 %v1065_v34, %s887_s21 }
  0x9f   :  { %v95_v36 = vpop.permute.xlu0 %94  ;;  %v97_v37 = vpop.permute.xlu1 %96 }
  0xa0   :  { %v1079_v38 = vsel %vm1018_vm0, %v951_v8, %v95_v36  ;;  %v1088_v39 = vsel %vm1018_vm0, %v953_v9, %v97_v37  ;;  %v1322_v37 = vld [vmem:[#allocation5] sm:$0xff] }
  0xa1   :  { %188 = vrot.lane.b32.xlu1 %v1074_v35, %s887_s21  ;;  %190 = vrot.lane.b32.xlu0 %v1079_v38, %s887_s21  ;;  %2378 = vst [vmem:[#allocation12_spill] sm:$0xff] %v1088_v39 }
  0xa3   :  { %v99_v40 = vpop.permute.xlu0 %98  ;;  %v101_v41 = vpop.permute.xlu1 %100 }
  0xa4   :  { %v1093_v42 = vsel %vm1018_vm0, %v959_v10, %v99_v40  ;;  %v1102_v43 = vsel %vm1018_vm0, %v961_v11, %v101_v41 }
  0xa5   :  { %2379 = vst [vmem:[#allocation13_spill] sm:$0xff] %v1093_v42  ;;  %192 = vrot.lane.b32.xlu1 %v1088_v39, %s887_s21  ;;  %194 = vrot.lane.b32.xlu0 %v1093_v42, %s887_s21  ;;  %2380 = vst [vmem:[#allocation14_spill] sm:$0xff] %v1102_v43 }
  0xa7   :  { %v103_v44 = vpop.permute.xlu0 %102  ;;  %v105_v45 = vpop.permute.xlu1 %104 }
  0xa8   :  { %v1107_v46 = vsel %vm1018_vm0, %v967_v12, %v103_v44  ;;  %v1116_v47 = vsel %vm1018_vm0, %v969_v13, %v105_v45  ;;  %v1332_v44 = vld [vmem:[#allocation5 + $0x8] sm:$0xff]  ;;  %v1334_v45 = vld [vmem:[#allocation5 + $0x10] sm:$0xff] }
  0xa9   :  { %2381 = vst [vmem:[#allocation15_spill] sm:$0xff] %v1107_v46  ;;  %196 = vrot.lane.b32.xlu1 %v1102_v43, %s887_s21  ;;  %198 = vrot.lane.b32.xlu0 %v1107_v46, %s887_s21  ;;  %2382 = vst [vmem:[#allocation16_spill] sm:$0xff] %v1116_v47 }
  0xab   :  { %v107_v48 = vpop.permute.xlu0 %106  ;;  %v109_v49 = vpop.permute.xlu1 %108 }
  0xac   :  { %v1121_v50 = vsel %vm1018_vm0, %v975_v14, %v107_v48  ;;  %v1130_v51 = vsel %vm1018_vm0, %v977_v15, %v109_v49 }
  0xad   :  { %2383 = vst [vmem:[#allocation17_spill] sm:$0xff] %v1121_v50  ;;  %200 = vrot.lane.b32.xlu1 %v1116_v47, %s887_s21  ;;  %202 = vrot.lane.b32.xlu0 %v1121_v50, %s887_s21  ;;  %2384 = vst [vmem:[#allocation18_spill] sm:$0xff] %v1130_v51 }
  0xaf   :  { %v127_v52 = vpop.permute.xlu0 %126  ;;  %v129_v53 = vpop.permute.xlu1 %128 }
  0xb0   :  { %v1135_v54 = vsel %vm1018_vm0, %v127_v52, %v919_v0  ;;  %v1144_v55 = vsel %vm1018_vm0, %v129_v53, %v927_v2  ;;  %v1344_v52 = vld [vmem:[#allocation5 + $0x18] sm:$0xff]  ;;  %v1346_v53 = vld [vmem:[#allocation5 + $0x20] sm:$0xff] }
  0xb1   :  { %2385 = vst [vmem:[#allocation19_spill] sm:$0xff] %v1135_v54  ;;  %204 = vrot.lane.b32.xlu1 %v1130_v51, %s887_s21  ;;  %222 = vrot.lane.b32.xlu0 %v1135_v54, %s887_s21  ;;  %2386 = vst [vmem:[#allocation20_spill] sm:$0xff] %v1144_v55 }
  0xb3   :  { %v131_v56 = vpop.permute.xlu0 %130  ;;  %v133_v57 = vpop.permute.xlu1 %132 }
  0xb4   :  { %v1149_v58 = vsel %vm1018_vm0, %v131_v56, %v921_v1  ;;  %v1158_v59 = vsel %vm1018_vm0, %v133_v57, %v929_v3 }
  0xb5   :  { %2387 = vst [vmem:[#allocation21_spill] sm:$0xff] %v1149_v58  ;;  %224 = vrot.lane.b32.xlu1 %v1144_v55, %s887_s21  ;;  %226 = vrot.lane.b32.xlu0 %v1149_v58, %s887_s21  ;;  %2388 = vst [vmem:[#allocation22_spill] sm:$0xff] %v1158_v59 }
  0xb7   :  { %v135_v60 = vpop.permute.xlu0 %134  ;;  %v137_v61 = vpop.permute.xlu1 %136 }
  0xb8   :  { %v1163_v62 = vsel %vm1018_vm0, %v135_v60, %v935_v4  ;;  %v1172_v63 = vsel %vm1018_vm0, %v137_v61, %v937_v5  ;;  %v1356_v60 = vld [vmem:[#allocation5 + $0x28] sm:$0xff]  ;;  %v1358_v61 = vld [vmem:[#allocation5 + $0x30] sm:$0xff] }
  0xb9   :  { %2389 = vst [vmem:[#allocation23_spill] sm:$0xff] %v1163_v62  ;;  %228 = vrot.lane.b32.xlu1 %v1158_v59, %s887_s21  ;;  %230 = vrot.lane.b32.xlu0 %v1163_v62, %s887_s21  ;;  %2390 = vst [vmem:[#allocation24_spill] sm:$0xff] %v1172_v63 }
  0xbb   :  { %v139_v0 = vpop.permute.xlu0 %138  ;;  %v141_v1 = vpop.permute.xlu1 %140 }
  0xbc   :  { %v1177_v2 = vsel %vm1018_vm0, %v139_v0, %v943_v6  ;;  %v1186_v3 = vsel %vm1018_vm0, %v141_v1, %v945_v7 }
  0xbd   :  { %2391 = vst [vmem:[#allocation25_spill] sm:$0xff] %v1177_v2  ;;  %232 = vrot.lane.b32.xlu1 %v1172_v63, %s887_s21  ;;  %234 = vrot.lane.b32.xlu0 %v1177_v2, %s887_s21  ;;  %2392 = vst [vmem:[#allocation26_spill] sm:$0xff] %v1186_v3 }
  0xbf   :  { %v143_v4 = vpop.permute.xlu0 %142  ;;  %v145_v5 = vpop.permute.xlu1 %144 }
  0xc0   :  { %v1191_v16 = vsel %vm1018_vm0, %v143_v4, %v951_v8  ;;  %v1200_v6 = vsel %vm1018_vm0, %v145_v5, %v953_v9  ;;  %v1368_v4 = vld [vmem:[#allocation5 + $0x38] sm:$0xff]  ;;  %v1370_v5 = vld [vmem:[#allocation5 + $0x40] sm:$0xff] }
  0xc1   :  { %2393 = vst [vmem:[#allocation27_spill] sm:$0xff] %v1191_v16  ;;  %236 = vrot.lane.b32.xlu1 %v1186_v3, %s887_s21  ;;  %238 = vrot.lane.b32.xlu0 %v1191_v16, %s887_s21  ;;  %2394 = vst [vmem:[#allocation28_spill] sm:$0xff] %v1200_v6 }
  0xc2   :  { %2407 = vst [vmem:[#allocation41_spill] sm:$0xff] %v1368_v4  ;;  %2408 = vst [vmem:[#allocation42_spill] sm:$0xff] %v1370_v5 }
  0xc3   :  { %v147_v7 = vpop.permute.xlu0 %146  ;;  %v149_v18 = vpop.permute.xlu1 %148 }
  0xc4   :  { %v1205_v20 = vsel %vm1018_vm0, %v147_v7, %v959_v10  ;;  %v1214_v8 = vsel %vm1018_vm0, %v149_v18, %v961_v11 }
  0xc5   :  { %2395 = vst [vmem:[#allocation29_spill] sm:$0xff] %v1205_v20  ;;  %240 = vrot.lane.b32.xlu1 %v1200_v6, %s887_s21  ;;  %242 = vrot.lane.b32.xlu0 %v1205_v20, %s887_s21  ;;  %2396 = vst [vmem:[#allocation30_spill] sm:$0xff] %v1214_v8 }
  0xc7   :  { %v151_v9 = vpop.permute.xlu0 %150  ;;  %v153_v21 = vpop.permute.xlu1 %152 }
  0xc8   :  { %v1219_v24 = vsel %vm1018_vm0, %v151_v9, %v967_v12  ;;  %v1228_v10 = vsel %vm1018_vm0, %v153_v21, %v969_v13  ;;  %v1380_v9 = vld [vmem:[#allocation5 + $0x48] sm:$0xff]  ;;  %v1382_v21 = vld [vmem:[#allocation5 + $0x50] sm:$0xff] }
  0xc9   :  { %2397 = vst [vmem:[#allocation31_spill] sm:$0xff] %v1219_v24  ;;  %244 = vrot.lane.b32.xlu1 %v1214_v8, %s887_s21  ;;  %246 = vrot.lane.b32.xlu0 %v1219_v24, %s887_s21  ;;  %2398 = vst [vmem:[#allocation32_spill] sm:$0xff] %v1228_v10 }
  0xca   :  { %2410 = vst [vmem:[#allocation44_spill] sm:$0xff] %v1380_v9  ;;  %2411 = vst [vmem:[#allocation45_spill] sm:$0xff] %v1382_v21 }
  0xcb   :  { %v155_v11 = vpop.permute.xlu0 %154  ;;  %v157_v25 = vpop.permute.xlu1 %156 }
  0xcc   :  { %v1233_v28 = vsel %vm1018_vm0, %v155_v11, %v975_v14  ;;  %v1242_v12 = vsel %vm1018_vm0, %v157_v25, %v977_v15 }
  0xcd   :  { %2399 = vst [vmem:[#allocation33_spill] sm:$0xff] %v1233_v28  ;;  %248 = vrot.lane.b32.xlu1 %v1228_v10, %s887_s21  ;;  %250 = vrot.lane.b32.xlu0 %v1233_v28, %s887_s21  ;;  %2400 = vst [vmem:[#allocation34_spill] sm:$0xff] %v1242_v12 }
  0xd1   :  { %252 = vrot.lane.b32.xlu1 %v1242_v12, %s887_s21  ;;  %270 = vrot.lane.b32.xlu0 %v1025_v22, %s888_s22 }
  0xd5   :  { %272 = vrot.lane.b32.xlu1 %v1037_v26, %s888_s22  ;;  %274 = vrot.lane.b32.xlu0 %v1032_v23, %s888_s22 }
  0xd9   :  { %276 = vrot.lane.b32.xlu1 %v1046_v27, %s888_s22  ;;  %278 = vrot.lane.b32.xlu0 %v1051_v30, %s888_s22 }
  0xdd   :  { %280 = vrot.lane.b32.xlu1 %v1060_v31, %s888_s22  ;;  %282 = vrot.lane.b32.xlu0 %v1065_v34, %s888_s22 }
  0xe1   :  { %284 = vrot.lane.b32.xlu1 %v1074_v35, %s888_s22  ;;  %286 = vrot.lane.b32.xlu0 %v1079_v38, %s888_s22 }
  0xe5   :  { %288 = vrot.lane.b32.xlu1 %v1088_v39, %s888_s22  ;;  %290 = vrot.lane.b32.xlu0 %v1093_v42, %s888_s22 }
  0xe9   :  { %292 = vrot.lane.b32.xlu1 %v1102_v43, %s888_s22  ;;  %294 = vrot.lane.b32.xlu0 %v1107_v46, %s888_s22 }
  0xed   :  { %296 = vrot.lane.b32.xlu1 %v1116_v47, %s888_s22  ;;  %298 = vrot.lane.b32.xlu0 %v1121_v50, %s888_s22  ;;  %v1406_v47 = vld [vmem:[#allocation5 + $0x70] sm:$0xff] }
  0xee   :  { %2415 = vst [vmem:[#allocation49_spill] sm:$0xff] %v1406_v47 }
  0xf1   :  { %300 = vrot.lane.b32.xlu1 %v1130_v51, %s888_s22  ;;  %318 = vrot.lane.b32.xlu0 %v1135_v54, %s888_s22  ;;  %v1392_v51 = vld [vmem:[#allocation5 + $0x58] sm:$0xff] }
  0xf2   :  { %2412 = vst [vmem:[#allocation46_spill] sm:$0xff] %v1392_v51 }
  0xf5   :  { %320 = vrot.lane.b32.xlu1 %v1144_v55, %s888_s22  ;;  %322 = vrot.lane.b32.xlu0 %v1149_v58, %s888_s22 }
  0xf9   :  { %324 = vrot.lane.b32.xlu1 %v1158_v59, %s888_s22  ;;  %326 = vrot.lane.b32.xlu0 %v1163_v62, %s888_s22 }
  0xfd   :  { %328 = vrot.lane.b32.xlu1 %v1172_v63, %s888_s22  ;;  %330 = vrot.lane.b32.xlu0 %v1177_v2, %s888_s22 }
 0x101   :  { %332 = vrot.lane.b32.xlu1 %v1186_v3, %s888_s22  ;;  %334 = vrot.lane.b32.xlu0 %v1191_v16, %s888_s22 }
 0x103   :  { %v1296_v13 = vpop.permute.xlu0 %174 }
 0x105   :  { %336 = vrot.lane.b32.xlu1 %v1200_v6, %s888_s22  ;;  %338 = vrot.lane.b32.xlu0 %v1205_v20, %s888_s22 }
 0x107   :  { %v1302_v14 = vpop.permute.xlu1 %176  ;;  %v1304_v15 = vpop.permute.xlu0 %178 }
 0x109   :  { %340 = vrot.lane.b32.xlu1 %v1214_v8, %s888_s22  ;;  %342 = vrot.lane.b32.xlu0 %v1219_v24, %s888_s22  ;;  %v1416_v8 = vld [vmem:[#allocation5 + $0x78] sm:$0xff] }
 0x10a   :  { %2416 = vst [vmem:[#allocation50_spill] sm:$0xff] %v1416_v8 }
 0x10b   :  { %v1310_v29 = vpop.permute.xlu1 %180  ;;  %v1312_v32 = vpop.permute.xlu0 %182 }
 0x10d   :  { %344 = vrot.lane.b32.xlu1 %v1228_v10, %s888_s22  ;;  %346 = vrot.lane.b32.xlu0 %v1233_v28, %s888_s22  ;;  %v1394_v10 = vld [vmem:[#allocation5 + $0x60] sm:$0xff] }
 0x10e   :  { %2413 = vst [vmem:[#allocation47_spill] sm:$0xff] %v1394_v10 }
 0x10f   :  { %v1318_v33 = vpop.permute.xlu1 %184  ;;  %v1320_v36 = vpop.permute.xlu0 %186 }
 0x111   :  { %348 = vrot.lane.b32.xlu1 %v1242_v12, %s888_s22  ;;  %366 = vrot.lane.b32.xlu0 %v1322_v37, %s886_s1 }
 0x113   :  { %v1328_v40 = vpop.permute.xlu1 %188  ;;  %v1330_v41 = vpop.permute.xlu0 %190 }
 0x115   :  { %368 = vrot.lane.b32.xlu1 %v1332_v44, %s886_s1  ;;  %370 = vrot.lane.b32.xlu0 %v1334_v45, %s886_s1 }
 0x117   :  { %v1340_v48 = vpop.permute.xlu1 %192  ;;  %v1342_v49 = vpop.permute.xlu0 %194 }
 0x118   :  { %2401 = vst [vmem:[#allocation35_spill] sm:$0xff] %v1340_v48  ;;  %2402 = vst [vmem:[#allocation36_spill] sm:$0xff] %v1342_v49  ;;  %v2364_v48 = vmov 1.0  }
 0x119   :  { %372 = vrot.lane.b32.xlu1 %v1344_v52, %s886_s1  ;;  %374 = vrot.lane.b32.xlu0 %v1346_v53, %s886_s1 }
 0x11b   :  { %v1352_v56 = vpop.permute.xlu1 %196  ;;  %v1354_v57 = vpop.permute.xlu0 %198 }
 0x11c   :  { %2403 = vst [vmem:[#allocation37_spill] sm:$0xff] %v1352_v56  ;;  %2404 = vst [vmem:[#allocation38_spill] sm:$0xff] %v1354_v57 }
 0x11d   :  { %376 = vrot.lane.b32.xlu1 %v1356_v60, %s886_s1  ;;  %378 = vrot.lane.b32.xlu0 %v1358_v61, %s886_s1 }
 0x11f   :  { %v1364_v0 = vpop.permute.xlu1 %200  ;;  %v1366_v1 = vpop.permute.xlu0 %202 }
 0x120   :  { %2405 = vst [vmem:[#allocation39_spill] sm:$0xff] %v1364_v0  ;;  %2406 = vst [vmem:[#allocation40_spill] sm:$0xff] %v1366_v1  ;;  %v1404_v1 = vld [vmem:[#allocation5 + $0x68] sm:$0xff] }
 0x121   :  { %380 = vrot.lane.b32.xlu1 %v1368_v4, %s886_s1  ;;  %382 = vrot.lane.b32.xlu0 %v1370_v5, %s886_s1  ;;  %2414 = vst [vmem:[#allocation48_spill] sm:$0xff] %v1404_v1 }
 0x123   :  { %v1376_v7 = vpop.permute.xlu1 %204  ;;  %v1378_v18 = vpop.permute.xlu0 %222 }
 0x124   :  { %2409 = vst [vmem:[#allocation43_spill] sm:$0xff] %v1376_v7 }
 0x125   :  { %384 = vrot.lane.b32.xlu1 %v1380_v9, %s886_s1  ;;  %386 = vrot.lane.b32.xlu0 %v1382_v21, %s886_s1 }
 0x127   :  { %v1388_v11 = vpop.permute.xlu1 %224  ;;  %v1390_v25 = vpop.permute.xlu0 %226 }
 0x129   :  { %388 = vrot.lane.b32.xlu1 %v1392_v51, %s886_s1  ;;  %390 = vrot.lane.b32.xlu0 %v1394_v10, %s886_s1 }
 0x12b   :  { %v1400_v7 = vpop.permute.xlu1 %228  ;;  %v1402_v50 = vpop.permute.xlu0 %230 }
 0x12d   :  { %392 = vrot.lane.b32.xlu1 %v1404_v1, %s886_s1  ;;  %394 = vrot.lane.b32.xlu0 %v1406_v47, %s886_s1 }
 0x12f   :  { %v1412_v0 = vpop.permute.xlu1 %232  ;;  %v1414_v24 = vpop.permute.xlu0 %234 }
 0x131   :  { %396 = vrot.lane.b32.xlu1 %v1416_v8, %s886_s1  ;;  %398 = vrot.lane.b32.xlu0 %v1322_v37, %s885_s0 }
 0x133   :  { %v1422_v46 = vpop.permute.xlu1 %236  ;;  %v1424_v57 = vpop.permute.xlu0 %238 }
 0x135   :  { %400 = vrot.lane.b32.xlu1 %v1332_v44, %s885_s0  ;;  %402 = vrot.lane.b32.xlu0 %v1334_v45, %s885_s0 }
 0x137   :  { %v1430_v43 = vpop.permute.xlu1 %240  ;;  %v1432_v56 = vpop.permute.xlu0 %242 }
 0x138   :  { %2417 = vst [vmem:[#allocation51_spill] sm:$0xff] %v1430_v43  ;;  %2418 = vst [vmem:[#allocation52_spill] sm:$0xff] %v1432_v56 }
 0x139   :  { %404 = vrot.lane.b32.xlu1 %v1344_v52, %s885_s0  ;;  %406 = vrot.lane.b32.xlu0 %v1346_v53, %s885_s0 }
 0x13b   :  { %v1438_v20 = vpop.permute.xlu1 %244  ;;  %v1440_v6 = vpop.permute.xlu0 %246 }
 0x13c   :  { %2419 = vst [vmem:[#allocation53_spill] sm:$0xff] %v1438_v20  ;;  %2420 = vst [vmem:[#allocation54_spill] sm:$0xff] %v1440_v6 }
 0x13d   :  { %408 = vrot.lane.b32.xlu1 %v1356_v60, %s885_s0  ;;  %410 = vrot.lane.b32.xlu0 %v1358_v61, %s885_s0 }
 0x13f   :  { %v1446_v42 = vpop.permute.xlu1 %248  ;;  %v1448_v43 = vpop.permute.xlu0 %250 }
 0x140   :  { %2421 = vst [vmem:[#allocation55_spill] sm:$0xff] %v1446_v42  ;;  %2422 = vst [vmem:[#allocation56_spill] sm:$0xff] %v1448_v43 }
 0x141   :  { %412 = vrot.lane.b32.xlu1 %v1368_v4, %s885_s0  ;;  %414 = vrot.lane.b32.xlu0 %v1370_v5, %s885_s0 }
 0x143   :  { %v1454_v56 = vpop.permute.xlu1 %252  ;;  %v1456_v20 = vpop.permute.xlu0 %270 }
 0x144   :  { %2423 = vst [vmem:[#allocation57_spill] sm:$0xff] %v1454_v56  ;;  %2424 = vst [vmem:[#allocation58_spill] sm:$0xff] %v1456_v20 }
 0x145   :  { %416 = vrot.lane.b32.xlu1 %v1380_v9, %s885_s0  ;;  %418 = vrot.lane.b32.xlu0 %v1382_v21, %s885_s0 }
 0x147   :  { %v1462_v6 = vpop.permute.xlu1 %272  ;;  %v1464_v42 = vpop.permute.xlu0 %274 }
 0x148   :  { %2425 = vst [vmem:[#allocation59_spill] sm:$0xff] %v1462_v6  ;;  %2426 = vst [vmem:[#allocation60_spill] sm:$0xff] %v1464_v42 }
 0x149   :  { %420 = vrot.lane.b32.xlu1 %v1392_v51, %s885_s0  ;;  %422 = vrot.lane.b32.xlu0 %v1394_v10, %s885_s0 }
 0x14b   :  { %v1470_v43 = vpop.permute.xlu1 %276  ;;  %v1472_v56 = vpop.permute.xlu0 %278  ;;  %v2508_v19 = vld [vmem:[#allocation58_spill] sm:$0xff] }
 0x14c   :  { %2427 = vst [vmem:[#allocation61_spill] sm:$0xff] %v1470_v43  ;;  %2428 = vst [vmem:[#allocation62_spill] sm:$0xff] %v1472_v56 }
 0x14d   :  { %424 = vrot.lane.b32.xlu1 %v1404_v1, %s885_s0  ;;  %426 = vrot.lane.b32.xlu0 %v1406_v47, %s885_s0 }
 0x14f   :  { %v1478_v20 = vpop.permute.xlu1 %280  ;;  %v1480_v6 = vpop.permute.xlu0 %282 }
 0x150   :  { %2429 = vst [vmem:[#allocation63_spill] sm:$0xff] %v1478_v20  ;;  %2430 = vst [vmem:[#allocation64_spill] sm:$0xff] %v1480_v6 }
 0x151   :  { %428 = vrot.lane.b32.xlu1 %v1416_v8, %s885_s0  ;;  %446 = vrot.lane.b32.xlu0 %v1322_v37, %s888_s22 }
 0x153   :  { %v1486_v42 = vpop.permute.xlu1 %284  ;;  %v1488_v43 = vpop.permute.xlu0 %286 }
 0x154   :  { %2431 = vst [vmem:[#allocation65_spill] sm:$0xff] %v1486_v42  ;;  %2432 = vst [vmem:[#allocation66_spill] sm:$0xff] %v1488_v43 }
 0x155   :  { %448 = vrot.lane.b32.xlu1 %v1332_v44, %s888_s22  ;;  %450 = vrot.lane.b32.xlu0 %v1334_v45, %s888_s22 }
 0x157   :  { %v1494_v56 = vpop.permute.xlu1 %288  ;;  %v1496_v20 = vpop.permute.xlu0 %290 }
 0x158   :  { %2433 = vst [vmem:[#allocation67_spill] sm:$0xff] %v1494_v56  ;;  %2434 = vst [vmem:[#allocation68_spill] sm:$0xff] %v1496_v20 }
 0x159   :  { %452 = vrot.lane.b32.xlu1 %v1344_v52, %s888_s22  ;;  %454 = vrot.lane.b32.xlu0 %v1346_v53, %s888_s22 }
 0x15b   :  { %v1502_v6 = vpop.permute.xlu1 %292  ;;  %v1504_v42 = vpop.permute.xlu0 %294 }
 0x15c   :  { %2435 = vst [vmem:[#allocation69_spill] sm:$0xff] %v1502_v6  ;;  %2436 = vst [vmem:[#allocation70_spill] sm:$0xff] %v1504_v42 }
 0x15d   :  { %456 = vrot.lane.b32.xlu1 %v1356_v60, %s888_s22  ;;  %458 = vrot.lane.b32.xlu0 %v1358_v61, %s888_s22 }
 0x15f   :  { %v1510_v43 = vpop.permute.xlu1 %296  ;;  %v1512_v56 = vpop.permute.xlu0 %298 }
 0x160   :  { %2437 = vst [vmem:[#allocation71_spill] sm:$0xff] %v1510_v43  ;;  %2438 = vst [vmem:[#allocation72_spill] sm:$0xff] %v1512_v56 }
 0x161   :  { %460 = vrot.lane.b32.xlu1 %v1368_v4, %s888_s22  ;;  %462 = vrot.lane.b32.xlu0 %v1370_v5, %s888_s22 }
 0x163   :  { %v1518_v20 = vpop.permute.xlu1 %300  ;;  %v1520_v6 = vpop.permute.xlu0 %318 }
 0x164   :  { %2439 = vst [vmem:[#allocation73_spill] sm:$0xff] %v1518_v20  ;;  %2440 = vst [vmem:[#allocation74_spill] sm:$0xff] %v1520_v6 }
 0x165   :  { %464 = vrot.lane.b32.xlu1 %v1380_v9, %s888_s22  ;;  %466 = vrot.lane.b32.xlu0 %v1382_v21, %s888_s22 }
 0x167   :  { %v1526_v42 = vpop.permute.xlu1 %320  ;;  %v1528_v43 = vpop.permute.xlu0 %322 }
 0x168   :  { %2441 = vst [vmem:[#allocation75_spill] sm:$0xff] %v1526_v42  ;;  %2442 = vst [vmem:[#allocation76_spill] sm:$0xff] %v1528_v43 }
 0x169   :  { %468 = vrot.lane.b32.xlu1 %v1392_v51, %s888_s22  ;;  %470 = vrot.lane.b32.xlu0 %v1394_v10, %s888_s22 }
 0x16b   :  { %v1534_v56 = vpop.permute.xlu1 %324  ;;  %v1536_v20 = vpop.permute.xlu0 %326 }
 0x16c   :  { %2443 = vst [vmem:[#allocation77_spill] sm:$0xff] %v1534_v56  ;;  %2444 = vst [vmem:[#allocation78_spill] sm:$0xff] %v1536_v20 }
 0x16d   :  { %472 = vrot.lane.b32.xlu1 %v1404_v1, %s888_s22  ;;  %474 = vrot.lane.b32.xlu0 %v1406_v47, %s888_s22 }
 0x16f   :  { %v1542_v6 = vpop.permute.xlu1 %328  ;;  %v1544_v42 = vpop.permute.xlu0 %330 }
 0x170   :  { %2445 = vst [vmem:[#allocation79_spill] sm:$0xff] %v1542_v6  ;;  %2446 = vst [vmem:[#allocation80_spill] sm:$0xff] %v1544_v42 }
 0x171   :  { %476 = vrot.lane.b32.xlu1 %v1416_v8, %s888_s22  ;;  %478 = vrot.lane.b32.xlu0 %v1322_v37, %s887_s21 }
 0x173   :  { %v1550_v43 = vpop.permute.xlu1 %332  ;;  %v1552_v56 = vpop.permute.xlu0 %334 }
 0x174   :  { %2447 = vst [vmem:[#allocation81_spill] sm:$0xff] %v1550_v43  ;;  %2448 = vst [vmem:[#allocation82_spill] sm:$0xff] %v1552_v56  ;;  %v76_v43 = vand.u32 2, %v1015_v17 }
 0x175   :  { %480 = vrot.lane.b32.xlu1 %v1332_v44, %s887_s21  ;;  %482 = vrot.lane.b32.xlu0 %v1334_v45, %s887_s21 }
 0x176   :  { %vm1575_vm1 = vcmp.eq.s32.totalorder %v76_v43, 0 }
 0x177   :  { %v1558_v20 = vpop.permute.xlu1 %336  ;;  %v1560_v6 = vpop.permute.xlu0 %338  ;;  %vm607_vm2 = vmxor %vm1018_vm0, %vm1575_vm1 }
 0x178   :  { %2449 = vst [vmem:[#allocation83_spill] sm:$0xff] %v1558_v20  ;;  %2450 = vst [vmem:[#allocation84_spill] sm:$0xff] %v1560_v6 }
 0x179   :  { %484 = vrot.lane.b32.xlu1 %v1344_v52, %s887_s21  ;;  %486 = vrot.lane.b32.xlu0 %v1346_v53, %s887_s21 }
 0x17b   :  { %v1567_v42 = vpop.permute.xlu1 %340  ;;  %v1569_v56 = vpop.permute.xlu0 %342 }
 0x17c   :  { %2451 = vst [vmem:[#allocation85_spill] sm:$0xff] %v1567_v42  ;;  %2452 = vst [vmem:[#allocation86_spill] sm:$0xff] %v1569_v56 }
 0x17d   :  { %488 = vrot.lane.b32.xlu1 %v1356_v60, %s887_s21  ;;  %490 = vrot.lane.b32.xlu0 %v1358_v61, %s887_s21 }
 0x17f   :  { %v1579_v20 = vpop.permute.xlu1 %344  ;;  %v1581_v49 = vpop.permute.xlu0 %346 }
 0x180   :  { %2455 = vst [vmem:[#allocation87_spill] sm:$0xff] %v1579_v20  ;;  %2456 = vst [vmem:[#allocation88_spill] sm:$0xff] %v1581_v49 }
 0x181   :  { %492 = vrot.lane.b32.xlu1 %v1368_v4, %s887_s21  ;;  %494 = vrot.lane.b32.xlu0 %v1370_v5, %s887_s21 }
 0x183   :  { %v1591_v56 = vpop.permute.xlu1 %348  ;;  %v367_v43 = vpop.permute.xlu0 %366 }
 0x184   :  { %2457 = vst [vmem:[#allocation89_spill] sm:$0xff] %v1591_v56 }
 0x185   :  { %496 = vrot.lane.b32.xlu1 %v1380_v9, %s887_s21  ;;  %498 = vrot.lane.b32.xlu0 %v1382_v21, %s887_s21 }
 0x187   :  { %v369_v17 = vpop.permute.xlu1 %368  ;;  %v371_v49 = vpop.permute.xlu0 %370 }
 0x189   :  { %500 = vrot.lane.b32.xlu1 %v1392_v51, %s887_s21  ;;  %502 = vrot.lane.b32.xlu0 %v1394_v10, %s887_s21 }
 0x18b   :  { %v373_v42 = vpop.permute.xlu1 %372  ;;  %v375_v28 = vpop.permute.xlu0 %374 }
 0x18d   :  { %504 = vrot.lane.b32.xlu1 %v1404_v1, %s887_s21  ;;  %506 = vrot.lane.b32.xlu0 %v1406_v47, %s887_s21 }
 0x18f   :  { %v377_v20 = vpop.permute.xlu1 %376  ;;  %v379_v56 = vpop.permute.xlu0 %378 }
 0x191   :  { %508 = vrot.lane.b32.xlu1 %v1416_v8, %s887_s21  ;;  %v1630_v8 = vsel %vm1018_vm0, -1.0, %v2364_v48  ;;  %v254_v48 = vsel %vm1575_vm1, %v1135_v54, %v1378_v18  ;;  %v2501_v54 = vld [vmem:[#allocation43_spill] sm:$0xff] }
 0x193   :  { %v1611_v12 = vpop.permute.xlu1 %380  ;;  %v1613_v21 = vpop.permute.xlu0 %382 }
 0x197   :  { %v1615_v51 = vpop.permute.xlu1 %384  ;;  %v1617_v10 = vpop.permute.xlu0 %386 }
 0x198   :  { %2458 = vst [vmem:[#allocation90_spill] sm:$0xff] %v1617_v10 }
 0x19b   :  { %v1619_v9 = vpop.permute.xlu1 %388  ;;  %v1621_v39 = vpop.permute.xlu0 %390 }
 0x19c   :  { %2459 = vst [vmem:[#allocation91_spill] sm:$0xff] %v1619_v9  ;;  %2460 = vst [vmem:[#allocation92_spill] sm:$0xff] %v1621_v39  ;;  %v206_v9 = vsel %vm1575_vm1, %v1025_v22, %v1296_v13 }
 0x19f   :  { %v1623_v1 = vpop.permute.xlu1 %392  ;;  %v1625_v47 = vpop.permute.xlu0 %394 }
 0x1a0   :  { %2461 = vst [vmem:[#allocation93_spill] sm:$0xff] %v1623_v1  ;;  %2462 = vst [vmem:[#allocation94_spill] sm:$0xff] %v1625_v47 }
 0x1a3   :  { %v1632_v5 = vpop.permute.xlu1 %396  ;;  %v399_v4 = vpop.permute.xlu0 %398 }
 0x1a4   :  { %2463 = vst [vmem:[#allocation95_spill] sm:$0xff] %v1632_v5  ;;  %v1640_v39 = vsel %vm1018_vm0, %v367_v43, %v399_v4  ;;  %v610_v5 = vmul.f32 %v206_v9, %v1322_v37  ;;  %v207_v4 = vsel %vm1575_vm1, %v1037_v26, %v1302_v14  ;;  %v208_v43 = vsel %vm1575_vm1, %v1032_v23, %v1304_v15 }
 0x1a5   :  { %v626_v47 = vmul.f32 %v1630_v8, %v1640_v39  ;;  %526 = vrot.lane.b32.xlu0 %v1640_v39, %s888_s22  ;;  %v256_v15 = vsel %vm1575_vm1, %v1149_v58, %v1390_v25 }
 0x1a7   :  { %v642_v1 = vmul.f32 %v626_v47, %v254_v48  ;;  %v401_v10 = vpop.permute.xlu1 %400  ;;  %v403_v13 = vpop.permute.xlu0 %402 }
 0x1a8   :  { %v1661_v22 = vsel %vm1018_vm0, %v369_v17, %v401_v10  ;;  %v1665_v37 = vsel %vm1018_vm0, %v371_v49, %v403_v13  ;;  %v255_v10 = vsel %vm1575_vm1, %v1144_v55, %v1388_v11  ;;  %v611_v49 = vmul.f32 %v207_v4, %v1332_v44 }
 0x1a9   :  { %v1667_v47 = vadd.f32 %v642_v1, %v610_v5  ;;  %v627_v48 = vmul.f32 %v1630_v8, %v1661_v22  ;;  %v628_v14 = vmul.f32 %v1630_v8, %v1665_v37  ;;  %528 = vrot.lane.b32.xlu1 %v1661_v22, %s888_s22  ;;  %530 = vrot.lane.b32.xlu0 %v1665_v37, %s888_s22 }
 0x1aa   :  { %v612_v1 = vmul.f32 %v208_v43, %v1334_v45  ;;  %v209_v13 = vsel %vm1575_vm1, %v1046_v27, %v1310_v29  ;;  %v210_v11 = vsel %vm1575_vm1, %v1051_v30, %v1312_v32 }
 0x1ab   :  { %v643_v5 = vmul.f32 %v627_v48, %v255_v10  ;;  %v644_v18 = vmul.f32 %v628_v14, %v256_v15  ;;  %v405_v9 = vpop.permute.xlu1 %404  ;;  %v407_v17 = vpop.permute.xlu0 %406  ;;  %v613_v32 = vmul.f32 %v209_v13, %v1344_v52  ;;  %v614_v48 = vmul.f32 %v210_v11, %v1346_v53 }
 0x1ac   :  { %v1697_v25 = vsel %vm1018_vm0, %v373_v42, %v405_v9  ;;  %v1701_v44 = vsel %vm1018_vm0, %v375_v28, %v407_v17  ;;  %v257_v42 = vsel %vm1575_vm1, %v1158_v59, %v1400_v7  ;;  %v258_v28 = vsel %vm1575_vm1, %v1163_v62, %v1402_v50  ;;  %v2492_v62 = vld [vmem:[#allocation17_spill] sm:$0xff] }
 0x1ad   :  { %v1703_v45 = vadd.f32 %v643_v5, %v611_v49  ;;  %v1705_v4 = vadd.f32 %v644_v18, %v612_v1  ;;  %v629_v29 = vmul.f32 %v1630_v8, %v1697_v25  ;;  %v630_v43 = vmul.f32 %v1630_v8, %v1701_v44  ;;  %532 = vrot.lane.b32.xlu1 %v1697_v25, %s888_s22 }
 0x1ae   :  { %534 = vrot.lane.b32.xlu0 %v1701_v44, %s888_s22  ;;  %v211_v7 = vsel %vm1575_vm1, %v1060_v31, %v1318_v33  ;;  %v212_v50 = vsel %vm1575_vm1, %v1065_v34, %v1320_v36  ;;  %v260_v36 = vsel %vm1575_vm1, %v1177_v2, %v1414_v24  ;;  %v214_v24 = vsel %vm1575_vm1, %v1079_v38, %v1330_v41  ;;  %v2489_v2 = vld [vmem:[#allocation39_spill] sm:$0xff] }
 0x1af   :  { %v645_v14 = vmul.f32 %v629_v29, %v257_v42  ;;  %v646_v10 = vmul.f32 %v630_v43, %v258_v28  ;;  %v409_v15 = vpop.permute.xlu1 %408  ;;  %v411_v49 = vpop.permute.xlu0 %410  ;;  %v616_v9 = vmul.f32 %v212_v50, %v1358_v61  ;;  %v2464_v28 = vld [vmem:[#allocation41_spill] sm:$0xff]  ;;  %v2466_v50 = vld [vmem:[#allocation35_spill] sm:$0xff] }
 0x1b0   :  { %v1735_v1 = vsel %vm1018_vm0, %v377_v20, %v409_v15  ;;  %v1739_v52 = vsel %vm1018_vm0, %v379_v56, %v411_v49  ;;  %v259_v20 = vsel %vm1575_vm1, %v1172_v63, %v1412_v0  ;;  %v615_v56 = vmul.f32 %v211_v7, %v1356_v60  ;;  %v2490_v63 = vld [vmem:[#allocation16_spill] sm:$0xff] }
 0x1b1   :  { %v1741_v53 = vadd.f32 %v645_v14, %v613_v32  ;;  %v1743_v5 = vadd.f32 %v646_v10, %v614_v48  ;;  %v631_v33 = vmul.f32 %v1630_v8, %v1735_v1  ;;  %v632_v18 = vmul.f32 %v1630_v8, %v1739_v52  ;;  %536 = vrot.lane.b32.xlu1 %v1735_v1, %s888_s22  ;;  %v2465_v48 = vld [vmem:[#allocation42_spill] sm:$0xff] }
 0x1b2   :  { %538 = vrot.lane.b32.xlu0 %v1739_v52, %s888_s22  ;;  %v213_v0 = vsel %vm1575_vm1, %v1074_v35, %v1328_v40  ;;  %v618_v14 = vmul.f32 %v214_v24, %v2465_v48 }
 0x1b3   :  { %v647_v17 = vmul.f32 %v631_v33, %v259_v20  ;;  %v648_v13 = vmul.f32 %v632_v18, %v260_v36  ;;  %v413_v11 = vpop.permute.xlu1 %412  ;;  %v415_v29 = vpop.permute.xlu0 %414  ;;  %v617_v32 = vmul.f32 %v213_v0, %v2464_v28  ;;  %v2467_v33 = vld [vmem:[#allocation12_spill] sm:$0xff]  ;;  %v2469_v20 = vld [vmem:[#allocation13_spill] sm:$0xff] }
 0x1b4   :  { %v1774_v60 = vsel %vm1018_vm0, %v1611_v12, %v413_v11  ;;  %v1779_v61 = vsel %vm1018_vm0, %v1613_v21, %v415_v29  ;;  %v261_v12 = vsel %vm1575_vm1, %v1186_v3, %v1422_v46  ;;  %v262_v21 = vsel %vm1575_vm1, %v1191_v16, %v1424_v57  ;;  %v2468_v18 = vld [vmem:[#allocation36_spill] sm:$0xff] }
 0x1b5   :  { %v1781_v43 = vadd.f32 %v647_v17, %v615_v56  ;;  %v1783_v42 = vadd.f32 %v648_v13, %v616_v9  ;;  %v633_v40 = vmul.f32 %v1630_v8, %v1774_v60  ;;  %v634_v41 = vmul.f32 %v1630_v8, %v1779_v61  ;;  %540 = vrot.lane.b32.xlu1 %v1774_v60, %s888_s22  ;;  %v2470_v56 = vld [vmem:[#allocation90_spill] sm:$0xff]  ;;  %v2472_v0 = vld [vmem:[#allocation28_spill] sm:$0xff] }
 0x1b6   :  { %542 = vrot.lane.b32.xlu0 %v1779_v61, %s888_s22  ;;  %v215_v46 = vsel %vm1575_vm1, %v2467_v33, %v2466_v50  ;;  %v216_v57 = vsel %vm1575_vm1, %v2469_v20, %v2468_v18  ;;  %v2478_v50 = vld [vmem:[#allocation14_spill] sm:$0xff] }
 0x1b7   :  { %v649_v10 = vmul.f32 %v633_v40, %v261_v12  ;;  %v650_v15 = vmul.f32 %v634_v41, %v262_v21  ;;  %v417_v49 = vpop.permute.xlu1 %416  ;;  %v419_v7 = vpop.permute.xlu0 %418  ;;  %v2473_v40 = vld [vmem:[#allocation52_spill] sm:$0xff]  ;;  %v2474_v41 = vld [vmem:[#allocation29_spill] sm:$0xff] }
 0x1b8   :  { %v1814_v36 = vsel %vm1018_vm0, %v1615_v51, %v417_v49  ;;  %v1819_v9 = vsel %vm1018_vm0, %v2470_v56, %v419_v7  ;;  %v2471_v51 = vld [vmem:[#allocation51_spill] sm:$0xff]  ;;  %v264_v12 = vsel %vm1575_vm1, %v2474_v41, %v2473_v40  ;;  %v2475_v21 = vld [vmem:[#allocation44_spill] sm:$0xff]  ;;  %v2477_v7 = vld [vmem:[#allocation37_spill] sm:$0xff] }
 0x1b9   :  { %v1821_v17 = vadd.f32 %v649_v10, %v617_v32  ;;  %v1823_v13 = vadd.f32 %v650_v15, %v618_v14  ;;  %v635_v11 = vmul.f32 %v1630_v8, %v1814_v36  ;;  %v636_v29 = vmul.f32 %v1630_v8, %v1819_v9  ;;  %544 = vrot.lane.b32.xlu1 %v1814_v36, %s888_s22  ;;  %v2476_v32 = vld [vmem:[#allocation45_spill] sm:$0xff]  ;;  %v2479_v56 = vld [vmem:[#allocation38_spill] sm:$0xff]  ;;  %v2481_v41 = vld [vmem:[#allocation91_spill] sm:$0xff] }
 0x1ba   :  { %v263_v24 = vsel %vm1575_vm1, %v2472_v0, %v2471_v51  ;;  %546 = vrot.lane.b32.xlu0 %v1819_v9, %s888_s22  ;;  %v619_v28 = vmul.f32 %v215_v46, %v2475_v21  ;;  %v620_v48 = vmul.f32 %v216_v57, %v2476_v32  ;;  %v217_v18 = vsel %vm1575_vm1, %v2478_v50, %v2477_v7  ;;  %v2480_v51 = vld [vmem:[#allocation15_spill] sm:$0xff]  ;;  %v2482_v57 = vld [vmem:[#allocation92_spill] sm:$0xff]  ;;  %v2484_v32 = vld [vmem:[#allocation30_spill] sm:$0xff] }
 0x1bb   :  { %v651_v14 = vmul.f32 %v635_v11, %v263_v24  ;;  %v652_v10 = vmul.f32 %v636_v29, %v264_v12  ;;  %v421_v15 = vpop.permute.xlu1 %420  ;;  %v423_v49 = vpop.permute.xlu0 %422  ;;  %v218_v40 = vsel %vm1575_vm1, %v2480_v51, %v2479_v56  ;;  %v2486_v7 = vld [vmem:[#allocation31_spill] sm:$0xff] }
 0x1bc   :  { %v1854_v46 = vsel %vm1018_vm0, %v2481_v41, %v421_v15  ;;  %v1859_v11 = vsel %vm1018_vm0, %v2482_v57, %v423_v49  ;;  %v2483_v41 = vld [vmem:[#allocation53_spill] sm:$0xff]  ;;  %v2485_v49 = vld [vmem:[#allocation54_spill] sm:$0xff] }
 0x1bd   :  { %v1861_v29 = vadd.f32 %v651_v14, %v619_v28  ;;  %v1863_v24 = vadd.f32 %v652_v10, %v620_v48  ;;  %v637_v12 = vmul.f32 %v1630_v8, %v1854_v46  ;;  %v638_v21 = vmul.f32 %v1630_v8, %v1859_v11  ;;  %548 = vrot.lane.b32.xlu1 %v1854_v46, %s888_s22  ;;  %v2487_v48 = vld [vmem:[#allocation46_spill] sm:$0xff]  ;;  %v2488_v10 = vld [vmem:[#allocation47_spill] sm:$0xff] }
 0x1be   :  { %v265_v15 = vsel %vm1575_vm1, %v2484_v32, %v2483_v41  ;;  %v266_v28 = vsel %vm1575_vm1, %v2486_v7, %v2485_v49  ;;  %550 = vrot.lane.b32.xlu0 %v1859_v11, %s888_s22  ;;  %v621_v14 = vmul.f32 %v217_v18, %v2487_v48  ;;  %v622_v56 = vmul.f32 %v218_v40, %v2488_v10  ;;  %v2491_v32 = vld [vmem:[#allocation40_spill] sm:$0xff]  ;;  %v2493_v7 = vld [vmem:[#allocation93_spill] sm:$0xff]  ;;  %v2494_v48 = vld [vmem:[#allocation94_spill] sm:$0xff] }
 0x1bf   :  { %v653_v57 = vmul.f32 %v637_v12, %v265_v15  ;;  %v654_v0 = vmul.f32 %v638_v21, %v266_v28  ;;  %v425_v16 = vpop.permute.xlu1 %424  ;;  %v427_v3 = vpop.permute.xlu0 %426  ;;  %v219_v41 = vsel %vm1575_vm1, %v2490_v63, %v2489_v2  ;;  %v220_v49 = vsel %vm1575_vm1, %v2492_v62, %v2491_v32  ;;  %v2495_v28 = vld [vmem:[#allocation55_spill] sm:$0xff]  ;;  %v2496_v32 = vld [vmem:[#allocation32_spill] sm:$0xff]  ;;  %v2502_v62 = vld [vmem:[#allocation18_spill] sm:$0xff] }
 0x1c0   :  { %v443_v18 = vsel %vm1018_vm0, %v2493_v7, %v425_v16  ;;  %v444_v40 = vsel %vm1018_vm0, %v2494_v48, %v427_v3  ;;  %v267_v10 = vsel %vm1575_vm1, %v2496_v32, %v2495_v28  ;;  %v2497_v16 = vld [vmem:[#allocation56_spill] sm:$0xff]  ;;  %v2498_v7 = vld [vmem:[#allocation33_spill] sm:$0xff]  ;;  %v221_v28 = vsel %vm1575_vm1, %v2502_v62, %v2501_v54  ;;  %v2503_v32 = vld [vmem:[#allocation95_spill] sm:$0xff] }
 0x1c1   :  { %v1897_v12 = vadd.f32 %v653_v57, %v621_v14  ;;  %v1899_v21 = vadd.f32 %v654_v0, %v622_v56  ;;  %v639_v15 = vmul.f32 %v1630_v8, %v443_v18  ;;  %v640_v2 = vmul.f32 %v1630_v8, %v444_v40  ;;  %552 = vrot.lane.b32.xlu1 %v443_v18, %s888_s22  ;;  %v2499_v0 = vld [vmem:[#allocation48_spill] sm:$0xff]  ;;  %v2500_v56 = vld [vmem:[#allocation49_spill] sm:$0xff]  ;;  %v2506_v54 = vld [vmem:[#allocation50_spill] sm:$0xff] }
 0x1c2   :  { %v268_v3 = vsel %vm1575_vm1, %v2498_v7, %v2497_v16  ;;  %554 = vrot.lane.b32.xlu0 %v444_v40, %s888_s22  ;;  %v623_v14 = vmul.f32 %v219_v41, %v2499_v0  ;;  %v624_v57 = vmul.f32 %v220_v49, %v2500_v56  ;;  %v2504_v49 = vld [vmem:[#allocation57_spill] sm:$0xff] }
 0x1c3   :  { %v655_v48 = vmul.f32 %v639_v15, %v267_v10  ;;  %v656_v59 = vmul.f32 %v640_v2, %v268_v3  ;;  %v429_v58 = vpop.permute.xlu1 %428  ;;  %v447_v55 = vpop.permute.xlu0 %446  ;;  %v2505_v15 = vld [vmem:[#allocation34_spill] sm:$0xff]  ;;  %v625_v10 = vmul.f32 %v221_v28, %v2506_v54 }
 0x1c4   :  { %v445_v63 = vsel %vm1018_vm0, %v2503_v32, %v429_v58  ;;  %v269_v2 = vsel %vm1575_vm1, %v2505_v15, %v2504_v49 }
 0x1c5   :  { %v1922_v16 = vadd.f32 %v655_v48, %v623_v14  ;;  %v1924_v7 = vadd.f32 %v656_v59, %v624_v57  ;;  %v641_v41 = vmul.f32 %v1630_v8, %v445_v63  ;;  %556 = vrot.lane.b32.xlu1 %v445_v63, %s888_s22  ;;  %v2507_v48 = vld [vmem:[#allocation11_spill] sm:$0xff] }
 0x1c6   :  { %558 = vrot.lane.b32.xlu0 %v1640_v39, %s887_s21 }
 0x1c7   :  { %v657_v3 = vmul.f32 %v641_v41, %v269_v2  ;;  %v449_v58 = vpop.permute.xlu1 %448  ;;  %v451_v32 = vpop.permute.xlu0 %450 }
 0x1c9   :  { %v1935_v0 = vadd.f32 %v657_v3, %v625_v10  ;;  %560 = vrot.lane.b32.xlu1 %v1661_v22, %s887_s21  ;;  %v2509_v10 = vld [vmem:[#allocation59_spill] sm:$0xff] }
 0x1ca   :  { %562 = vrot.lane.b32.xlu0 %v1665_v37, %s887_s21  ;;  %v303_v3 = vsel %vm1575_vm1, %v2509_v10, %v1037_v26 }
 0x1cb   :  { %v453_v59 = vpop.permute.xlu1 %452  ;;  %v455_v8 = vpop.permute.xlu0 %454 }
 0x1cd   :  { %564 = vrot.lane.b32.xlu1 %v1697_v25, %s887_s21 }
 0x1ce   :  { %566 = vrot.lane.b32.xlu0 %v1701_v44, %s887_s21 }
 0x1cf   :  { %v457_v39 = vpop.permute.xlu1 %456  ;;  %v459_v14 = vpop.permute.xlu0 %458 }
 0x1d1   :  { %568 = vrot.lane.b32.xlu1 %v1735_v1, %s887_s21 }
 0x1d2   :  { %570 = vrot.lane.b32.xlu0 %v1739_v52, %s887_s21 }
 0x1d3   :  { %v1949_v22 = vpop.permute.xlu1 %460  ;;  %v1951_v56 = vpop.permute.xlu0 %462 }
 0x1d5   :  { %572 = vrot.lane.b32.xlu1 %v1774_v60, %s887_s21 }
 0x1d6   :  { %574 = vrot.lane.b32.xlu0 %v1779_v61, %s887_s21  ;;  %v890_v61 = vmov -1.0  }
 0x1d7   :  { %v1957_v37 = vpop.permute.xlu1 %464  ;;  %v1959_v25 = vpop.permute.xlu0 %466 }
 0x1d9   :  { %576 = vrot.lane.b32.xlu1 %v1814_v36, %s887_s21  ;;  %v1983_v36 = vsel %vm607_vm2, 1.0, %v890_v61  ;;  %v2510_v61 = vld [vmem:[#allocation60_spill] sm:$0xff] }
 0x1da   :  { %578 = vrot.lane.b32.xlu0 %v1819_v9, %s887_s21 }
 0x1db   :  { %v1965_v44 = vpop.permute.xlu1 %468  ;;  %v1967_v1 = vpop.permute.xlu0 %470 }
 0x1dd   :  { %580 = vrot.lane.b32.xlu1 %v1854_v46, %s887_s21 }
 0x1de   :  { %582 = vrot.lane.b32.xlu0 %v1859_v11, %s887_s21 }
 0x1df   :  { %v1973_v52 = vpop.permute.xlu1 %472  ;;  %v1975_v60 = vpop.permute.xlu0 %474 }
 0x1e1   :  { %584 = vrot.lane.b32.xlu1 %v443_v18, %s887_s21  ;;  %v302_v18 = vsel %vm1575_vm1, %v2508_v19, %v2507_v48 }
 0x1e2   :  { %586 = vrot.lane.b32.xlu0 %v444_v40, %s887_s21 }
 0x1e3   :  { %v1985_v9 = vpop.permute.xlu1 %476  ;;  %v479_v46 = vpop.permute.xlu0 %478 }
 0x1e4   :  { %v510_v11 = vsel %vm1575_vm1, %v447_v55, %v479_v46 }
 0x1e5   :  { %v674_v57 = vmul.f32 %v1983_v36, %v510_v11  ;;  %588 = vrot.lane.b32.xlu1 %v445_v63, %s887_s21 }
 0x1e7   :  { %v690_v28 = vmul.f32 %v674_v57, %v302_v18  ;;  %v481_v40 = vpop.permute.xlu1 %480  ;;  %v483_v41 = vpop.permute.xlu0 %482 }
 0x1e8   :  { %v511_v49 = vsel %vm1575_vm1, %v449_v58, %v481_v40  ;;  %v512_v2 = vsel %vm1575_vm1, %v451_v32, %v483_v41  ;;  %v304_v58 = vsel %vm1575_vm1, %v2510_v61, %v1032_v23 }
 0x1e9   :  { %v2000_v55 = vadd.f32 %v690_v28, %v1667_v47  ;;  %v675_v54 = vmul.f32 %v1983_v36, %v511_v49  ;;  %v676_v63 = vmul.f32 %v1983_v36, %v512_v2  ;;  %v2511_v28 = vld [vmem:[#allocation61_spill] sm:$0xff] }
 0x1ea   :  { %v305_v40 = vsel %vm1575_vm1, %v2511_v28, %v1046_v27 }
 0x1eb   :  { %v691_v46 = vmul.f32 %v675_v54, %v303_v3  ;;  %v692_v11 = vmul.f32 %v676_v63, %v304_v58  ;;  %v485_v32 = vpop.permute.xlu1 %484  ;;  %v487_v57 = vpop.permute.xlu0 %486  ;;  %v2513_v3 = vld [vmem:[#allocation63_spill] sm:$0xff] }
 0x1ec   :  { %v513_v47 = vsel %vm1575_vm1, %v453_v59, %v485_v32  ;;  %v514_v48 = vsel %vm1575_vm1, %v455_v8, %v487_v57  ;;  %v2512_v59 = vld [vmem:[#allocation62_spill] sm:$0xff]  ;;  %v307_v61 = vsel %vm1575_vm1, %v2513_v3, %v1060_v31 }
 0x1ed   :  { %v2017_v19 = vadd.f32 %v691_v46, %v1703_v45  ;;  %v2020_v26 = vadd.f32 %v692_v11, %v1705_v4  ;;  %v677_v18 = vmul.f32 %v1983_v36, %v513_v47  ;;  %v678_v23 = vmul.f32 %v1983_v36, %v514_v48  ;;  %v2515_v48 = vld [vmem:[#allocation65_spill] sm:$0xff] }
 0x1ee   :  { %v306_v8 = vsel %vm1575_vm1, %v2512_v59, %v1051_v30 }
 0x1ef   :  { %v693_v41 = vmul.f32 %v677_v18, %v305_v40  ;;  %v694_v45 = vmul.f32 %v678_v23, %v306_v8  ;;  %v489_v49 = vpop.permute.xlu1 %488  ;;  %v491_v2 = vpop.permute.xlu0 %490  ;;  %v309_v18 = vsel %vm1575_vm1, %v2515_v48, %v1074_v35  ;;  %v2524_v48 = vld [vmem:[#allocation72_spill] sm:$0xff] }
 0x1f0   :  { %v515_v4 = vsel %vm1575_vm1, %v457_v39, %v489_v49  ;;  %v516_v54 = vsel %vm1575_vm1, %v459_v14, %v491_v2  ;;  %v2514_v39 = vld [vmem:[#allocation64_spill] sm:$0xff] }
 0x1f1   :  { %v2037_v63 = vadd.f32 %v693_v41, %v1741_v53  ;;  %v2040_v27 = vadd.f32 %v694_v45, %v1743_v5  ;;  %v679_v10 = vmul.f32 %v1983_v36, %v515_v4  ;;  %v680_v30 = vmul.f32 %v1983_v36, %v516_v54  ;;  %v2517_v45 = vld [vmem:[#allocation67_spill] sm:$0xff] }
 0x1f2   :  { %v308_v14 = vsel %vm1575_vm1, %v2514_v39, %v1065_v34  ;;  %v311_v49 = vsel %vm1575_vm1, %v2517_v45, %v2467_v33 }
 0x1f3   :  { %v695_v58 = vmul.f32 %v679_v10, %v307_v61  ;;  %v696_v53 = vmul.f32 %v680_v30, %v308_v14  ;;  %v493_v46 = vpop.permute.xlu1 %492  ;;  %v495_v11 = vpop.permute.xlu0 %494  ;;  %v2519_v61 = vld [vmem:[#allocation69_spill] sm:$0xff] }
 0x1f4   :  { %v517_v5 = vsel %vm1575_vm1, %v1949_v22, %v493_v46  ;;  %v518_v32 = vsel %vm1575_vm1, %v1951_v56, %v495_v11  ;;  %v2516_v22 = vld [vmem:[#allocation66_spill] sm:$0xff]  ;;  %v313_v39 = vsel %vm1575_vm1, %v2519_v61, %v2478_v50 }
 0x1f5   :  { %v2059_v57 = vadd.f32 %v695_v58, %v1781_v43  ;;  %v2062_v31 = vadd.f32 %v696_v53, %v1783_v42  ;;  %v681_v34 = vmul.f32 %v1983_v36, %v517_v5  ;;  %v682_v47 = vmul.f32 %v1983_v36, %v518_v32  ;;  %v2521_v32 = vld [vmem:[#allocation16_spill] sm:$0xff] }
 0x1f6   :  { %v310_v56 = vsel %vm1575_vm1, %v2516_v22, %v1079_v38 }
 0x1f7   :  { %v697_v23 = vmul.f32 %v681_v34, %v309_v18  ;;  %v698_v43 = vmul.f32 %v682_v47, %v310_v56  ;;  %v497_v28 = vpop.permute.xlu1 %496  ;;  %v499_v40 = vpop.permute.xlu0 %498  ;;  %v2522_v34 = vld [vmem:[#allocation71_spill] sm:$0xff] }
 0x1f8   :  { %v519_v42 = vsel %vm1575_vm1, %v1957_v37, %v497_v28  ;;  %v520_v59 = vsel %vm1575_vm1, %v1959_v25, %v499_v40  ;;  %v2518_v37 = vld [vmem:[#allocation68_spill] sm:$0xff]  ;;  %v315_v47 = vsel %vm1575_vm1, %v2522_v34, %v2521_v32  ;;  %v2525_v28 = vld [vmem:[#allocation73_spill] sm:$0xff] }
 0x1f9   :  { %v2081_v8 = vadd.f32 %v697_v23, %v1821_v17  ;;  %v2084_v35 = vadd.f32 %v698_v43, %v1823_v13  ;;  %v683_v38 = vmul.f32 %v1983_v36, %v519_v42  ;;  %v684_v41 = vmul.f32 %v1983_v36, %v520_v59 }
 0x1fa   :  { %v312_v25 = vsel %vm1575_vm1, %v2518_v37, %v2469_v20  ;;  %v317_v40 = vsel %vm1575_vm1, %v2525_v28, %v2502_v62 }
 0x1fb   :  { %v699_v2 = vmul.f32 %v683_v38, %v311_v49  ;;  %v700_v17 = vmul.f32 %v684_v41, %v312_v25  ;;  %v501_v4 = vpop.permute.xlu1 %500  ;;  %v503_v54 = vpop.permute.xlu0 %502 }
 0x1fc   :  { %v521_v13 = vsel %vm1575_vm1, %v1965_v44, %v501_v4  ;;  %v522_v10 = vsel %vm1575_vm1, %v1967_v1, %v503_v54  ;;  %v2520_v44 = vld [vmem:[#allocation70_spill] sm:$0xff] }
 0x1fd   :  { %v2103_v30 = vadd.f32 %v699_v2, %v1861_v29  ;;  %v2106_v33 = vadd.f32 %v700_v17, %v1863_v24  ;;  %v685_v20 = vmul.f32 %v1983_v36, %v521_v13  ;;  %v686_v3 = vmul.f32 %v1983_v36, %v522_v10 }
 0x1fe   :  { %v314_v1 = vsel %vm1575_vm1, %v2520_v44, %v2480_v51  ;;  %v2526_v13 = vmov 1.0   ;;  %v2528_v44 = vld [vmem:[#allocation74_spill] sm:$0xff] }
 0x1ff   :  { %v701_v14 = vmul.f32 %v685_v20, %v313_v39  ;;  %v702_v29 = vmul.f32 %v686_v3, %v314_v1  ;;  %v505_v58 = vpop.permute.xlu1 %504  ;;  %v507_v53 = vpop.permute.xlu0 %506  ;;  %v2176_v10 = vsel %vm1575_vm1, -1.0, %v2526_v13  ;;  %v2527_v39 = vld [vmem:[#allocation19_spill] sm:$0xff] }
 0x200   :  { %v523_v24 = vsel %vm1575_vm1, %v1973_v52, %v505_v58  ;;  %v524_v46 = vsel %vm1575_vm1, %v1975_v60, %v507_v53  ;;  %v2523_v52 = vld [vmem:[#allocation17_spill] sm:$0xff]  ;;  %v350_v1 = vsel %vm1575_vm1, %v2528_v44, %v2527_v39 }
 0x201   :  { %v2125_v11 = vadd.f32 %v701_v14, %v1897_v12  ;;  %v2128_v50 = vadd.f32 %v702_v29, %v1899_v21  ;;  %v687_v51 = vmul.f32 %v1983_v36, %v523_v24  ;;  %v688_v5 = vmul.f32 %v1983_v36, %v524_v46 }
 0x202   :  { %v316_v60 = vsel %vm1575_vm1, %v2524_v48, %v2523_v52  ;;  %v2531_v52 = vld [vmem:[#allocation21_spill] sm:$0xff]  ;;  %v2532_v48 = vld [vmem:[#allocation76_spill] sm:$0xff] }
 0x203   :  { %v703_v18 = vmul.f32 %v687_v51, %v315_v47  ;;  %v704_v12 = vmul.f32 %v688_v5, %v316_v60  ;;  %v509_v22 = vpop.permute.xlu1 %508  ;;  %v2529_v51 = vld [vmem:[#allocation20_spill] sm:$0xff]  ;;  %v2530_v5 = vld [vmem:[#allocation75_spill] sm:$0xff]  ;;  %v352_v60 = vsel %vm1575_vm1, %v2532_v48, %v2531_v52 }
 0x204   :  { %v525_v21 = vsel %vm1575_vm1, %v1985_v9, %v509_v22  ;;  %v351_v32 = vsel %vm1575_vm1, %v2530_v5, %v2529_v51  ;;  %v2539_v51 = vld [vmem:[#allocation25_spill] sm:$0xff]  ;;  %v2540_v5 = vld [vmem:[#allocation80_spill] sm:$0xff] }
 0x205   :  { %v2144_v56 = vadd.f32 %v703_v18, %v1922_v16  ;;  %v2147_v23 = vadd.f32 %v704_v12, %v1924_v7  ;;  %v689_v43 = vmul.f32 %v1983_v36, %v525_v21 }
 0x207   :  { %v705_v42 = vmul.f32 %v689_v43, %v317_v40 }
 0x209   :  { %v2155_v59 = vadd.f32 %v705_v42, %v1935_v0  ;;  %v2533_v42 = vld [vmem:[#allocation22_spill] sm:$0xff] }
 0x217   :  { %v527_v38 = vpop.permute.xlu0 %526 }
 0x21b   :  { %v529_v41 = vpop.permute.xlu1 %528  ;;  %v531_v9 = vpop.permute.xlu0 %530 }
 0x21f   :  { %v533_v45 = vpop.permute.xlu1 %532 }
 0x220   :  { %v535_v16 = vpop.permute.xlu0 %534 }
 0x223   :  { %v537_v49 = vpop.permute.xlu1 %536 }
 0x224   :  { %v539_v37 = vpop.permute.xlu0 %538 }
 0x227   :  { %v541_v7 = vpop.permute.xlu1 %540 }
 0x228   :  { %v2157_v25 = vpop.permute.xlu0 %542 }
 0x22b   :  { %v2159_v36 = vpop.permute.xlu1 %544 }
 0x22c   :  { %v2161_v2 = vpop.permute.xlu0 %546 }
 0x22f   :  { %v2163_v17 = vpop.permute.xlu1 %548 }
 0x230   :  { %v2165_v62 = vpop.permute.xlu0 %550 }
 0x233   :  { %v2167_v0 = vpop.permute.xlu1 %552 }
 0x234   :  { %v2169_v4 = vpop.permute.xlu0 %554 }
 0x237   :  { %v2171_v54 = vpop.permute.xlu1 %556 }
 0x238   :  { %v559_v20 = vpop.permute.xlu0 %558 }
 0x239   :  { %v590_v3 = vsel %vm1575_vm1, %v527_v38, %v559_v20  ;;  %v2534_v38 = vld [vmem:[#allocation77_spill] sm:$0xff]  ;;  %v2535_v20 = vld [vmem:[#allocation23_spill] sm:$0xff] }
 0x23a   :  { %v722_v61 = vmul.f32 %v2176_v10, %v590_v3  ;;  %v2536_v3 = vld [vmem:[#allocation78_spill] sm:$0xff] }
 0x23b   :  { %v561_v14 = vpop.permute.xlu1 %560 }
 0x23c   :  { %v738_v29 = vmul.f32 %v722_v61, %v350_v1  ;;  %v591_v58 = vsel %vm1575_vm1, %v529_v41, %v561_v14  ;;  %v563_v53 = vpop.permute.xlu0 %562  ;;  %v353_v41 = vsel %vm1575_vm1, %v2534_v38, %v2533_v42 }
 0x23d   :  { %v723_v24 = vmul.f32 %v2176_v10, %v591_v58  ;;  %v592_v46 = vsel %vm1575_vm1, %v531_v9, %v563_v53  ;;  %v2538_v58 = vld [vmem:[#allocation79_spill] sm:$0xff] }
 0x23e   :  { %v754_v34 = vadd.f32 %v738_v29, %v2000_v55  ;;  %v724_v47 = vmul.f32 %v2176_v10, %v592_v46  ;;  %v2537_v29 = vld [vmem:[#allocation24_spill] sm:$0xff] }
 0x23f   :  { %v739_v18 = vmul.f32 %v723_v24, %v351_v32  ;;  %v565_v12 = vpop.permute.xlu1 %564  ;;  %v355_v53 = vsel %vm1575_vm1, %v2538_v58, %v2537_v29  ;;  %v2550_v29 = vld [vmem:[#allocation85_spill] sm:$0xff] }
 0x240   :  { %770 = vst [vmem:[#allocation7] sm:$0xff] %v754_v34  ;;  %v740_v22 = vmul.f32 %v724_v47, %v352_v60  ;;  %v593_v21 = vsel %vm1575_vm1, %v533_v45, %v565_v12  ;;  %v567_v43 = vpop.permute.xlu0 %566  ;;  %v354_v45 = vsel %vm1575_vm1, %v2536_v3, %v2535_v20  ;;  %v2541_v60 = vld [vmem:[#allocation26_spill] sm:$0xff] }
 0x241   :  { %v755_v28 = vadd.f32 %v739_v18, %v2017_v19  ;;  %v725_v40 = vmul.f32 %v2176_v10, %v593_v21  ;;  %v594_v55 = vsel %vm1575_vm1, %v535_v16, %v567_v43  ;;  %v2542_v18 = vld [vmem:[#allocation81_spill] sm:$0xff]  ;;  %v2543_v43 = vld [vmem:[#allocation27_spill] sm:$0xff] }
 0x242   :  { %v756_v9 = vadd.f32 %v740_v22, %v2020_v26  ;;  %v726_v13 = vmul.f32 %v2176_v10, %v594_v55  ;;  %v357_v12 = vsel %vm1575_vm1, %v2542_v18, %v2541_v60  ;;  %v2556_v18 = vld [vmem:[#allocation33_spill] sm:$0xff] }
 0x243   :  { %771 = vst [vmem:[#allocation7 + $0x8] sm:$0xff] %v755_v28  ;;  %v741_v19 = vmul.f32 %v725_v40, %v353_v41  ;;  %v569_v61 = vpop.permute.xlu1 %568 }
 0x244   :  { %772 = vst [vmem:[#allocation7 + $0x10] sm:$0xff] %v756_v9  ;;  %v742_v39 = vmul.f32 %v726_v13, %v354_v45  ;;  %v595_v16 = vsel %vm1575_vm1, %v537_v49, %v569_v61  ;;  %v571_v44 = vpop.permute.xlu0 %570  ;;  %v356_v49 = vsel %vm1575_vm1, %v2540_v5, %v2539_v51  ;;  %v2545_v9 = vld [vmem:[#allocation28_spill] sm:$0xff]  ;;  %v2546_v13 = vld [vmem:[#allocation83_spill] sm:$0xff] }
 0x245   :  { %v757_v1 = vadd.f32 %v741_v19, %v2037_v63  ;;  %v727_v26 = vmul.f32 %v2176_v10, %v595_v16  ;;  %v596_v14 = vsel %vm1575_vm1, %v539_v37, %v571_v44  ;;  %v359_v20 = vsel %vm1575_vm1, %v2546_v13, %v2545_v9  ;;  %v2547_v19 = vld [vmem:[#allocation29_spill] sm:$0xff] }
 0x246   :  { %v758_v24 = vadd.f32 %v742_v39, %v2040_v27  ;;  %v728_v46 = vmul.f32 %v2176_v10, %v596_v14  ;;  %v2549_v14 = vld [vmem:[#allocation30_spill] sm:$0xff] }
 0x247   :  { %773 = vst [vmem:[#allocation7 + $0x18] sm:$0xff] %v757_v1  ;;  %v743_v63 = vmul.f32 %v727_v26, %v355_v53  ;;  %v573_v32 = vpop.permute.xlu1 %572  ;;  %v361_v58 = vsel %vm1575_vm1, %v2550_v29, %v2549_v14 }
 0x248   :  { %774 = vst [vmem:[#allocation7 + $0x20] sm:$0xff] %v758_v24  ;;  %v744_v34 = vmul.f32 %v728_v46, %v356_v49  ;;  %v597_v37 = vsel %vm1575_vm1, %v541_v7, %v573_v32  ;;  %v575_v47 = vpop.permute.xlu0 %574  ;;  %v2544_v7 = vld [vmem:[#allocation82_spill] sm:$0xff]  ;;  %v2551_v46 = vld [vmem:[#allocation31_spill] sm:$0xff] }
 0x249   :  { %v759_v52 = vadd.f32 %v743_v63, %v2059_v57  ;;  %v729_v27 = vmul.f32 %v2176_v10, %v597_v37  ;;  %v598_v48 = vsel %vm1575_vm1, %v2157_v25, %v575_v47  ;;  %v358_v57 = vsel %vm1575_vm1, %v2544_v7, %v2543_v43  ;;  %v2553_v37 = vld [vmem:[#allocation32_spill] sm:$0xff]  ;;  %v2554_v47 = vld [vmem:[#allocation87_spill] sm:$0xff]  ;;  %v2558_v7 = vld [vmem:[#allocation89_spill] sm:$0xff] }
 0x24a   :  { %v760_v22 = vadd.f32 %v744_v34, %v2062_v31  ;;  %v730_v21 = vmul.f32 %v2176_v10, %v598_v48 }
 0x24b   :  { %775 = vst [vmem:[#allocation7 + $0x28] sm:$0xff] %v759_v52  ;;  %v745_v28 = vmul.f32 %v729_v27, %v357_v12  ;;  %v577_v40 = vpop.permute.xlu1 %576  ;;  %v363_v52 = vsel %vm1575_vm1, %v2554_v47, %v2553_v37 }
 0x24c   :  { %776 = vst [vmem:[#allocation7 + $0x30] sm:$0xff] %v760_v22  ;;  %v746_v55 = vmul.f32 %v730_v21, %v358_v57  ;;  %v599_v25 = vsel %vm1575_vm1, %v2159_v36, %v577_v40  ;;  %v579_v42 = vpop.permute.xlu0 %578  ;;  %v2548_v36 = vld [vmem:[#allocation84_spill] sm:$0xff]  ;;  %v2559_v57 = vsel %vm1575_vm1, %v2558_v7, %v2505_v15 }
 0x24d   :  { %v761_v38 = vadd.f32 %v745_v28, %v2081_v8  ;;  %v731_v31 = vmul.f32 %v2176_v10, %v599_v25  ;;  %v600_v41 = vsel %vm1575_vm1, %v2161_v2, %v579_v42  ;;  %v360_v8 = vsel %vm1575_vm1, %v2548_v36, %v2547_v19 }
 0x24e   :  { %v762_v3 = vadd.f32 %v746_v55, %v2084_v35  ;;  %v732_v45 = vmul.f32 %v2176_v10, %v600_v41 }
 0x24f   :  { %777 = vst [vmem:[#allocation7 + $0x38] sm:$0xff] %v761_v38  ;;  %v747_v61 = vmul.f32 %v731_v31, %v359_v20  ;;  %v581_v39 = vpop.permute.xlu1 %580 }
 0x250   :  { %778 = vst [vmem:[#allocation7 + $0x40] sm:$0xff] %v762_v3  ;;  %v748_v16 = vmul.f32 %v732_v45, %v360_v8  ;;  %v601_v2 = vsel %vm1575_vm1, %v2163_v17, %v581_v39  ;;  %v583_v44 = vpop.permute.xlu0 %582  ;;  %v2552_v17 = vld [vmem:[#allocation86_spill] sm:$0xff] }
 0x251   :  { %v763_v1 = vadd.f32 %v747_v61, %v2103_v30  ;;  %v733_v35 = vmul.f32 %v2176_v10, %v601_v2  ;;  %v602_v26 = vsel %vm1575_vm1, %v2165_v62, %v583_v44  ;;  %v362_v30 = vsel %vm1575_vm1, %v2552_v17, %v2551_v46 }
 0x252   :  { %v764_v53 = vadd.f32 %v748_v16, %v2106_v33  ;;  %v734_v24 = vmul.f32 %v2176_v10, %v602_v26 }
 0x253   :  { %779 = vst [vmem:[#allocation7 + $0x48] sm:$0xff] %v763_v1  ;;  %v749_v51 = vmul.f32 %v733_v35, %v361_v58  ;;  %v585_v5 = vpop.permute.xlu1 %584 }
 0x254   :  { %780 = vst [vmem:[#allocation7 + $0x50] sm:$0xff] %v764_v53  ;;  %v750_v49 = vmul.f32 %v734_v24, %v362_v30  ;;  %v603_v62 = vsel %vm1575_vm1, %v2167_v0, %v585_v5  ;;  %v587_v63 = vpop.permute.xlu0 %586 }
 0x255   :  { %v765_v32 = vadd.f32 %v749_v51, %v2125_v11  ;;  %v735_v33 = vmul.f32 %v2176_v10, %v603_v62  ;;  %v604_v34 = vsel %vm1575_vm1, %v2169_v4, %v587_v63  ;;  %v2555_v11 = vld [vmem:[#allocation88_spill] sm:$0xff] }
 0x256   :  { %v766_v27 = vadd.f32 %v750_v49, %v2128_v50  ;;  %v736_v48 = vmul.f32 %v2176_v10, %v604_v34  ;;  %v2557_v12 = vsel %vm1575_vm1, %v2555_v11, %v2556_v18 }
 0x257   :  { %781 = vst [vmem:[#allocation7 + $0x58] sm:$0xff] %v765_v32  ;;  %v751_v0 = vmul.f32 %v735_v33, %v363_v52  ;;  %v589_v60 = vpop.permute.xlu1 %588 }
 0x258   :  { %782 = vst [vmem:[#allocation7 + $0x60] sm:$0xff] %v766_v27  ;;  %v752_v22 = vmul.f32 %v736_v48, %v2557_v12  ;;  %v605_v4 = vsel %vm1575_vm1, %v2171_v54, %v589_v60 }
 0x259   :  { %v767_v21 = vadd.f32 %v751_v0, %v2144_v56  ;;  %v737_v50 = vmul.f32 %v2176_v10, %v605_v4 }
 0x25a   :  { %v768_v43 = vadd.f32 %v752_v22, %v2147_v23 }
 0x25b   :  { %783 = vst [vmem:[#allocation7 + $0x68] sm:$0xff] %v767_v21  ;;  %v753_v28 = vmul.f32 %v737_v50, %v2559_v57 }
 0x25c   :  { %784 = vst [vmem:[#allocation7 + $0x70] sm:$0xff] %v768_v43 }
 0x25d   :  { %v769_v40 = vadd.f32 %v753_v28, %v2155_v59 }
 0x25f   :  { %785 = vst [vmem:[#allocation7 + $0x78] sm:$0xff] %v769_v40 }
 0x260   :  { %866 = shalt.err (!%p863_p0)
}
 0x261   :  { %797 = dma.vmem_to_hbm [thread:$0]  %s792_s24, 2048, %s2324_s2, [#allocation4], %s882_s12, %s882_s12, %s883_s13  }
 0x262   :  { %879 = dma.done.wait [#allocation4], 2048  }
 0x263   :  { %880 = vsyncadd [#allocation4], 4294965248 }
 0x264   :  { %801 = vsyncpa [#allocation3], 1 }
 0x265   :  { %802 = vsyncpa [#allocation6], 1 }
 0x266   :  { %803 = vsyncpa [#allocation4], 1 }

</bundles_post_ra>
